<compile_context>
chip_gen: v7x
topology: tpu7x:2x2x1
jax: 0.10.0
libtpu: 0.0.40
codegen_flags: <defaults>
</compile_context>

<pallas_src>
import functools

import jax
import jax.numpy as jnp
from jax.experimental import pallas as pl
from jax.experimental.pallas import tpu as pltpu


# ----------------------------- Pallas kernel -----------------------------

def rnn_embedding_kernel(idx_ref, *rest, S, B_pad, H, GP, num_layers):
    """Fused embedding + stacked (skewed) GRU, PyTorch [r, z, n] gate order.

    idx_ref : (S*B_pad, EL_pad) int32, value 0 exactly where the one-hot is 1.
    per-layer refs: (w_ih^T or fused0, w_hh^T, b_fold, b_hh_n), gate axis padded to GP lanes.
    out_ref : (B_pad, H) f32 — top-layer hidden state at the last timestep.
    gi_ref  : (S, B_pad, GP) f32 scratch — hoisted layer-0 input gates.
    """
    n_layer_refs = 4 * num_layers
    layer_refs = rest[:n_layer_refs]
    out_ref = rest[n_layer_refs]
    gi_ref = rest[n_layer_refs + 1]

    # ---- embedding ⊗ layer-0 W_ih, hoisted over the whole sequence: one MXU matmul ----
    onehot = (idx_ref[...] == 0).astype(jnp.bfloat16)                   # (R, EL_pad) bf16
    fused0 = layer_refs[0][...]                                         # (EL_pad, GP) bf16
    b_fold0 = layer_refs[2][...]                                        # (1, GP) f32
    gi0 = jnp.dot(onehot, fused0, preferred_element_type=jnp.float32)   # (R, GP) f32
    gi_ref[...] = gi0.reshape(S, B_pad, GP) + b_fold0                   # lane-dense stores

    # ---- per-layer constants, loaded / broadcast once (hoisted out of the wave loop) ----
    w_ih = [None] + [layer_refs[4 * l][...] for l in range(1, num_layers)]        # (H, GP) bf16
    w_hh = [layer_refs[4 * l + 1][...] for l in range(num_layers)]                # (H, GP) bf16
    b_fold = [None] + [layer_refs[4 * l + 2][...] for l in range(1, num_layers)]  # (1, GP) f32
    b_hh_n = [jnp.broadcast_to(layer_refs[4 * l + 3][...], (B_pad, H))
              for l in range(num_layers)]                                         # (B_pad, H) f32

    def gru_cell(gi, gh, h_prev, bn):
        r = jax.nn.sigmoid(gi[:, 0:H] + gh[:, 0:H])
        z = jax.nn.sigmoid(gi[:, H:2 * H] + gh[:, H:2 * H])
        n = jnp.tanh(gi[:, 2 * H:3 * H] + r * (gh[:, 2 * H:3 * H] + bn))
        return (1.0 - z) * n + z * h_prev

    # ---- skewed wave loop: at wave w, layer l handles timestep (w - l). Every update in a wave
    # reads only previous-wave carries, so the per-layer recurrent matmuls within a wave are
    # independent (MXU pushes overlap; on v7x the MRB accepts the out-of-order accumulations). ----
    # TODO(synk): for large S, bound the unroll (steady-state lax.fori_loop with jnp.where guards
    # or an "arbitrary" grid axis over time) to avoid instruction / vreg live-range blowup.
    h = [jnp.zeros((B_pad, H), jnp.float32) for _ in range(num_layers)]
    for w in range(S + num_layers - 1):
        h_bf = [x.astype(jnp.bfloat16) for x in h]      # one bf16 cast per carry per wave
        new_h = list(h)
        for l in range(num_layers):
            t = w - l
            if not (0 <= t < S):                        # static prologue/epilogue guard
                continue
            if l == 0:
                gi = gi_ref[t]                          # (B_pad, GP) f32, leading-axis index
            else:
                gi = jnp.dot(h_bf[l - 1], w_ih[l],
                             preferred_element_type=jnp.float32) + b_fold[l]
            gh = jnp.dot(h_bf[l], w_hh[l], preferred_element_type=jnp.float32)
            new_h[l] = gru_cell(gi, gh, h[l], b_hh_n[l])
        h = new_h

    out_ref[...] = h[num_layers - 1]


# ----------------------------- wrapper -----------------------------

def rnn_embedding_forward(idx, emb_table, layer_params, *, B, S, E, Hemb, H, L):
    """idx: (B, S, E) int32 encoded IOs; layer_params: list of (w_ih, w_hh, b_ih, b_hh) in
    PyTorch shapes (3H, in), (3H, H), (3H,), (3H,). Returns (B, H) f32."""
    del Hemb  # implied by emb_table.shape[1]
    num_layers = len(layer_params)
    B_pad = max(8, ((B + 7) // 8) * 8)            # sublane-pad the batch
    R = S * B_pad
    EL = E * L
    EL_pad = ((EL + 127) // 128) * 128            # lane-pad the one-hot axis
    GP = ((3 * H + 127) // 128) * 128             # lane-pad the gate axis (96 -> 128)

    # seq-major (S, B, E) layout; padded batch rows use token 0 and are discarded at the end.
    idx_sm = jnp.transpose(idx, (1, 0, 2)).astype(jnp.int32)
    idx_sm = jnp.pad(idx_sm, ((0, 0), (0, B_pad - B), (0, 0)))
    idx2 = idx_sm.reshape(R, E)

    # fold the comparison pattern into the idx input: (idx_diff == 0) <=> one-hot == 1.
    pattern = jnp.tile(jnp.arange(L, dtype=jnp.int32), E)[None, :]      # (1, EL)
    idx_diff = jnp.repeat(idx2, L, axis=1) - pattern                    # (R, EL)
    idx_diff = jnp.pad(idx_diff, ((0, 0), (0, EL_pad - EL)), constant_values=1)

    def pad_gates(x):   # (*, 3H) -> (*, GP), zero-filled padding columns are never read
        return jnp.pad(x, ((0, 0), (0, GP - 3 * H)))

    flat_args = [idx_diff]
    for li, (w_ih, w_hh, b_ih, b_hh) in enumerate(layer_params):
        if li == 0:
            # fuse the block-diagonal embedding table into layer-0 W_ih (f32 fuse, one bf16 cast)
            emb_block = jnp.kron(jnp.eye(E, dtype=jnp.float32),
                                 emb_table.astype(jnp.float32))         # (EL, Hin)
            fused0 = emb_block @ w_ih.astype(jnp.float32).T             # (EL, 3H) f32
            fused0 = jnp.pad(fused0, ((0, EL_pad - EL), (0, GP - 3 * H)))
            w_in = fused0.astype(jnp.bfloat16)                          # (EL_pad, GP)
        else:
            w_in = pad_gates(w_ih.T).astype(jnp.bfloat16)               # (in, GP)
        # bias fold: [b_ih_r + b_hh_r, b_ih_z + b_hh_z, b_ih_n]; only n-gate b_hh stays separate
        b_fold = jnp.concatenate([b_ih[:2 * H] + b_hh[:2 * H], b_ih[2 * H:]]).reshape(1, 3 * H)
        flat_args += [
            w_in,
            pad_gates(w_hh.T).astype(jnp.bfloat16),                     # (H, GP)
            pad_gates(b_fold).astype(jnp.float32),                      # (1, GP)
            b_hh[2 * H:].reshape(1, H).astype(jnp.float32),             # (1, H) n-gate b_hh
        ]

    kernel = functools.partial(rnn_embedding_kernel, S=S, B_pad=B_pad, H=H, GP=GP,
                               num_layers=num_layers)
    vmem = pltpu.MemorySpace.VMEM
    # TODO(synk): for production batch sizes, add a ("parallel",) grid axis over padded batch
    # (uses both v7x TensorCores + BlockSpec auto-pipelining of the idx DMA) and re-budget VMEM
    # explicitly (64 MiB physical on v7x): the one-hot operand is O(R*E*L) — switch to a
    # scalar-prefetch gather/DMA embedding path for large lexicons.
    out = pl.pallas_call(
        kernel,
        out_shape=jax.ShapeDtypeStruct((B_pad, H), jnp.float32),
        in_specs=[pl.BlockSpec(memory_space=vmem) for _ in flat_args],
        out_specs=pl.BlockSpec(memory_space=vmem),
        scratch_shapes=[pltpu.VMEM((S, B_pad, GP), jnp.float32)],       # hoisted layer-0 GI
    )(*flat_args)
    return out[:B]


# ----------------------------- pure-JAX reference -----------------------------
# PyTorch-faithful f32 GRU (gate order [r, z, n], bias placement as in torch.nn.GRU).
# The kernel uses bf16 MXU operands + the fused embedding table, so comparison tolerance is
# set at the bf16-rounding level.

def rnn_embedding_reference(idx, emb_table, layer_params, *, B, S, E, H):
    x = emb_table[idx.reshape(-1)].reshape(B, S, -1)                    # (B, S, Hin)
    for (w_ih, w_hh, b_ih, b_hh) in layer_params:
        h = jnp.zeros((B, H), jnp.float32)
        outs = []
        for t in range(S):
            gi = x[:, t, :] @ w_ih.T + b_ih
            gh = h @ w_hh.T + b_hh
            r = jax.nn.sigmoid(gi[:, :H] + gh[:, :H])
            z = jax.nn.sigmoid(gi[:, H:2 * H] + gh[:, H:2 * H])
            n = jnp.tanh(gi[:, 2 * H:] + r * gh[:, 2 * H:])
            h = (1.0 - z) * n + z * h
            outs.append(h)
        x = jnp.stack(outs, axis=1)
    return x[:, -1, :]


# ----------------------------- main -----------------------------

if __name__ == "__main__":
    # Module hyper-parameters (small, consistent with __init__)
    lexicon_size = 20           # IOEncoder.lexicon_size
    enc_dim = 4                 # IOEncoder.output_dimension (E)
    size_hidden = 8             # embedding dim (Hemb)
    output_dimension = 8
    num_layers = 2              # number_layers_RNN
    Hin = size_hidden * enc_dim                 # 32
    Hout = enc_dim * output_dimension           # 32

    B, S = 2, 8                 # batch of IO-sets, IOs per set (sequence length)

    key = jax.random.PRNGKey(0)
    k_idx, k_emb, *k_layers = jax.random.split(key, 2 + 4 * num_layers)

    # "encoded IOs": deterministic int token ids in [0, lexicon_size)
    idx = jax.random.randint(k_idx, (B, S, enc_dim), 0, lexicon_size, dtype=jnp.int32)

    # nn.Embedding weight
    emb_table = jax.random.normal(k_emb, (lexicon_size, size_hidden), jnp.float32)

    # nn.GRU weights, PyTorch shapes: w_ih (3H, in), w_hh (3H, H), biases (3H,)
    layer_params = []
    scale = 1.0 / jnp.sqrt(jnp.float32(Hout))
    for l in range(num_layers):
        in_sz = Hin if l == 0 else Hout
        k0, k1, k2, k3 = jax.random.split(k_layers[l], 4)
        w_ih = jax.random.uniform(k0, (3 * Hout, in_sz), jnp.float32, -scale, scale)
        w_hh = jax.random.uniform(k1, (3 * Hout, Hout), jnp.float32, -scale, scale)
        b_ih = jax.random.uniform(k2, (3 * Hout,), jnp.float32, -scale, scale)
        b_hh = jax.random.uniform(k3, (3 * Hout,), jnp.float32, -scale, scale)
        layer_params.append((w_ih, w_hh, b_ih, b_hh))

    out = rnn_embedding_forward(
        idx, emb_table, layer_params,
        B=B, S=S, E=enc_dim, Hemb=size_hidden, H=Hout, L=lexicon_size)
    out = jax.block_until_ready(out)

    ref = rnn_embedding_reference(idx, emb_table, layer_params, B=B, S=S, E=enc_dim, H=Hout)
    assert out.shape == (B, Hout)
    # bf16 MXU operands + fused (single-rounded) embedding table vs f32 reference => bf16-level tol
    assert jnp.allclose(out, ref, atol=2e-2, rtol=2e-2), "Pallas output mismatch vs reference"

    # TODO(synk): IOEncoder.encode_IOs is an arbitrary Python encoder; pre-encoded int ids are
    # supplied directly instead.
    print("KERNEL_OK")
</pallas_src>

<mosaic_0001>
module attributes {stable_mosaic.version = 11 : i64} {
  func.func @rnn_embedding_kernel(%arg0: memref<64x128xi32, #tpu.memory_space<vmem>>, %arg1: memref<128x128xbf16, #tpu.memory_space<vmem>>, %arg2: memref<32x128xbf16, #tpu.memory_space<vmem>>, %arg3: memref<1x128xf32, #tpu.memory_space<vmem>>, %arg4: memref<1x32xf32, #tpu.memory_space<vmem>>, %arg5: memref<32x128xbf16, #tpu.memory_space<vmem>>, %arg6: memref<32x128xbf16, #tpu.memory_space<vmem>>, %arg7: memref<1x128xf32, #tpu.memory_space<vmem>>, %arg8: memref<1x32xf32, #tpu.memory_space<vmem>>, %arg9: memref<8x32xf32, #tpu.memory_space<vmem>>, %arg10: memref<8x8x128xf32, #tpu.memory_space<vmem>>) attributes {dimension_semantics = [], scalar_prefetch = 0 : i64, scratch_operands = 1 : i64, tpu.core_type = #tpu.core_type<tc>} {
    %c0 = arith.constant 0 : index
    %c0_0 = arith.constant 0 : index
    %0 = vector.load %arg0[%c0, %c0_0] : memref<64x128xi32, #tpu.memory_space<vmem>>, vector<64x128xi32>
    %c0_i32 = arith.constant 0 : i32
    %1 = vector.broadcast %c0_i32 : i32 to vector<64x128xi32>
    %2 = arith.cmpi eq, %0, %1 : vector<64x128xi32>
    %3 = arith.extui %2 : vector<64x128xi1> to vector<64x128xi32>
    %4 = arith.sitofp %3 : vector<64x128xi32> to vector<64x128xf32>
    %5 = arith.truncf %4 : vector<64x128xf32> to vector<64x128xbf16>
    %c0_1 = arith.constant 0 : index
    %c0_2 = arith.constant 0 : index
    %6 = vector.load %arg1[%c0_1, %c0_2] : memref<128x128xbf16, #tpu.memory_space<vmem>>, vector<128x128xbf16>
    %c0_3 = arith.constant 0 : index
    %c0_4 = arith.constant 0 : index
    %7 = vector.load %arg3[%c0_3, %c0_4] : memref<1x128xf32, #tpu.memory_space<vmem>>, vector<1x128xf32>
    %cst = arith.constant dense<0.000000e+00> : vector<64x128xf32>
    %8 = tpu.matmul %5, %6, %cst {dimension_numbers = #tpu.dot_dimension_numbers<[1], [0], [0], [1], [0, 0, 1, 1], [], []>} : vector<64x128xbf16>, vector<128x128xbf16>, vector<64x128xf32> -> vector<64x128xf32>
    %9 = vector.shape_cast %8 : vector<64x128xf32> to vector<8x8x128xf32>
    %10 = vector.shape_cast %7 : vector<1x128xf32> to vector<1x1x128xf32>
    %11 = vector.broadcast %10 : vector<1x1x128xf32> to vector<8x8x128xf32>
    %12 = arith.addf %9, %11 : vector<8x8x128xf32>
    %c0_5 = arith.constant 0 : index
    %c0_6 = arith.constant 0 : index
    %c0_7 = arith.constant 0 : index
    %13 = vector.load %arg10[%c0_5, %c0_6, %c0_7] : memref<8x8x128xf32, #tpu.memory_space<vmem>>, vector<8x8x128xf32>
    tpu.vector_store %arg10[%c0_5, %c0_6, %c0_7], %12 {strides = array<i32>} : memref<8x8x128xf32, #tpu.memory_space<vmem>>, vector<8x8x128xf32>,
    %c0_8 = arith.constant 0 : index
    %c0_9 = arith.constant 0 : index
    %14 = vector.load %arg5[%c0_8, %c0_9] : memref<32x128xbf16, #tpu.memory_space<vmem>>, vector<32x128xbf16>
    %c0_10 = arith.constant 0 : index
    %c0_11 = arith.constant 0 : index
    %15 = vector.load %arg2[%c0_10, %c0_11] : memref<32x128xbf16, #tpu.memory_space<vmem>>, vector<32x128xbf16>
    %c0_12 = arith.constant 0 : index
    %c0_13 = arith.constant 0 : index
    %16 = vector.load %arg6[%c0_12, %c0_13] : memref<32x128xbf16, #tpu.memory_space<vmem>>, vector<32x128xbf16>
    %c0_14 = arith.constant 0 : index
    %c0_15 = arith.constant 0 : index
    %17 = vector.load %arg7[%c0_14, %c0_15] : memref<1x128xf32, #tpu.memory_space<vmem>>, vector<1x128xf32>
    %c0_16 = arith.constant 0 : index
    %c0_17 = arith.constant 0 : index
    %18 = vector.load %arg4[%c0_16, %c0_17] : memref<1x32xf32, #tpu.memory_space<vmem>>, vector<1x32xf32>
    %19 = vector.shape_cast %18 : vector<1x32xf32> to vector<1x32xf32>
    %20 = vector.broadcast %19 : vector<1x32xf32> to vector<8x32xf32>
    %c0_18 = arith.constant 0 : index
    %c0_19 = arith.constant 0 : index
    %21 = vector.load %arg8[%c0_18, %c0_19] : memref<1x32xf32, #tpu.memory_space<vmem>>, vector<1x32xf32>
    %22 = vector.shape_cast %21 : vector<1x32xf32> to vector<1x32xf32>
    %23 = vector.broadcast %22 : vector<1x32xf32> to vector<8x32xf32>
    %cst_20 = arith.constant 0.000000e+00 : f32
    %24 = vector.broadcast %cst_20 : f32 to vector<8x32xf32>
    %cst_21 = arith.constant 0.000000e+00 : f32
    %25 = vector.broadcast %cst_21 : f32 to vector<8x32xf32>
    %26 = arith.truncf %24 : vector<8x32xf32> to vector<8x32xbf16>
    %c0_22 = arith.constant 0 : index
    %c0_23 = arith.constant 0 : index
    %c0_24 = arith.constant 0 : index
    %27 = vector.load %arg10[%c0_22, %c0_23, %c0_24] : memref<8x8x128xf32, #tpu.memory_space<vmem>>, vector<1x8x128xf32>
    %28 = vector.shape_cast %27 : vector<1x8x128xf32> to vector<8x128xf32>
    %cst_25 = arith.constant dense<0.000000e+00> : vector<8x128xf32>
    %29 = tpu.matmul %26, %15, %cst_25 {dimension_numbers = #tpu.dot_dimension_numbers<[1], [0], [0], [1], [0, 0, 1, 1], [], []>} : vector<8x32xbf16>, vector<32x128xbf16>, vector<8x128xf32> -> vector<8x128xf32>
    %30 = vector.extract_strided_slice %28 {offsets = [0, 0], sizes = [8, 32], strides = [1, 1]} : vector<8x128xf32> to vector<8x32xf32>
    %31 = vector.extract_strided_slice %29 {offsets = [0, 0], sizes = [8, 32], strides = [1, 1]} : vector<8x128xf32> to vector<8x32xf32>
    %32 = arith.addf %30, %31 : vector<8x32xf32>
    %33 = arith.negf %32 : vector<8x32xf32>
    %34 = math.exp %33 : vector<8x32xf32>
    %cst_26 = arith.constant 1.000000e+00 : f32
    %35 = vector.broadcast %cst_26 : f32 to vector<8x32xf32>
    %36 = arith.addf %35, %34 : vector<8x32xf32>
    %37 = arith.divf %35, %36 : vector<8x32xf32>
    %38 = vector.extract_strided_slice %28 {offsets = [0, 32], sizes = [8, 32], strides = [1, 1]} : vector<8x128xf32> to vector<8x32xf32>
    %39 = vector.extract_strided_slice %29 {offsets = [0, 32], sizes = [8, 32], strides = [1, 1]} : vector<8x128xf32> to vector<8x32xf32>
    %40 = arith.addf %38, %39 : vector<8x32xf32>
    %41 = arith.negf %40 : vector<8x32xf32>
    %42 = math.exp %41 : vector<8x32xf32>
    %cst_27 = arith.constant 1.000000e+00 : f32
    %43 = vector.broadcast %cst_27 : f32 to vector<8x32xf32>
    %44 = arith.addf %43, %42 : vector<8x32xf32>
    %45 = arith.divf %43, %44 : vector<8x32xf32>
    %46 = vector.extract_strided_slice %28 {offsets = [0, 64], sizes = [8, 32], strides = [1, 1]} : vector<8x128xf32> to vector<8x32xf32>
    %47 = vector.extract_strided_slice %29 {offsets = [0, 64], sizes = [8, 32], strides = [1, 1]} : vector<8x128xf32> to vector<8x32xf32>
    %48 = arith.addf %47, %20 : vector<8x32xf32>
    %49 = arith.mulf %37, %48 : vector<8x32xf32>
    %50 = arith.addf %46, %49 : vector<8x32xf32>
    %51 = math.tanh %50 : vector<8x32xf32>
    %cst_28 = arith.constant 1.000000e+00 : f32
    %52 = vector.broadcast %cst_28 : f32 to vector<8x32xf32>
    %53 = arith.subf %52, %45 : vector<8x32xf32>
    %54 = arith.mulf %53, %51 : vector<8x32xf32>
    %55 = arith.mulf %45, %24 : vector<8x32xf32>
    %56 = arith.addf %54, %55 : vector<8x32xf32>
    %57 = arith.truncf %56 : vector<8x32xf32> to vector<8x32xbf16>
    %58 = arith.truncf %25 : vector<8x32xf32> to vector<8x32xbf16>
    %c1 = arith.constant 1 : index
    %c0_29 = arith.constant 0 : index
    %c0_30 = arith.constant 0 : index
    %59 = vector.load %arg10[%c1, %c0_29, %c0_30] : memref<8x8x128xf32, #tpu.memory_space<vmem>>, vector<1x8x128xf32>
    %60 = vector.shape_cast %59 : vector<1x8x128xf32> to vector<8x128xf32>
    %cst_31 = arith.constant dense<0.000000e+00> : vector<8x128xf32>
    %61 = tpu.matmul %57, %15, %cst_31 {dimension_numbers = #tpu.dot_dimension_numbers<[1], [0], [0], [1], [0, 0, 1, 1], [], []>} : vector<8x32xbf16>, vector<32x128xbf16>, vector<8x128xf32> -> vector<8x128xf32>
    %62 = vector.extract_strided_slice %60 {offsets = [0, 0], sizes = [8, 32], strides = [1, 1]} : vector<8x128xf32> to vector<8x32xf32>
    %63 = vector.extract_strided_slice %61 {offsets = [0, 0], sizes = [8, 32], strides = [1, 1]} : vector<8x128xf32> to vector<8x32xf32>
    %64 = arith.addf %62, %63 : vector<8x32xf32>
    %65 = arith.negf %64 : vector<8x32xf32>
    %66 = math.exp %65 : vector<8x32xf32>
    %cst_32 = arith.constant 1.000000e+00 : f32
    %67 = vector.broadcast %cst_32 : f32 to vector<8x32xf32>
    %68 = arith.addf %67, %66 : vector<8x32xf32>
    %69 = arith.divf %67, %68 : vector<8x32xf32>
    %70 = vector.extract_strided_slice %60 {offsets = [0, 32], sizes = [8, 32], strides = [1, 1]} : vector<8x128xf32> to vector<8x32xf32>
    %71 = vector.extract_strided_slice %61 {offsets = [0, 32], sizes = [8, 32], strides = [1, 1]} : vector<8x128xf32> to vector<8x32xf32>
    %72 = arith.addf %70, %71 : vector<8x32xf32>
    %73 = arith.negf %72 : vector<8x32xf32>
    %74 = math.exp %73 : vector<8x32xf32>
    %cst_33 = arith.constant 1.000000e+00 : f32
    %75 = vector.broadcast %cst_33 : f32 to vector<8x32xf32>
    %76 = arith.addf %75, %74 : vector<8x32xf32>
    %77 = arith.divf %75, %76 : vector<8x32xf32>
    %78 = vector.extract_strided_slice %60 {offsets = [0, 64], sizes = [8, 32], strides = [1, 1]} : vector<8x128xf32> to vector<8x32xf32>
    %79 = vector.extract_strided_slice %61 {offsets = [0, 64], sizes = [8, 32], strides = [1, 1]} : vector<8x128xf32> to vector<8x32xf32>
    %80 = arith.addf %79, %20 : vector<8x32xf32>
    %81 = arith.mulf %69, %80 : vector<8x32xf32>
    %82 = arith.addf %78, %81 : vector<8x32xf32>
    %83 = math.tanh %82 : vector<8x32xf32>
    %cst_34 = arith.constant 1.000000e+00 : f32
    %84 = vector.broadcast %cst_34 : f32 to vector<8x32xf32>
    %85 = arith.subf %84, %77 : vector<8x32xf32>
    %86 = arith.mulf %85, %83 : vector<8x32xf32>
    %87 = arith.mulf %77, %56 : vector<8x32xf32>
    %88 = arith.addf %86, %87 : vector<8x32xf32>
    %cst_35 = arith.constant dense<0.000000e+00> : vector<8x128xf32>
    %89 = tpu.matmul %57, %14, %cst_35 {dimension_numbers = #tpu.dot_dimension_numbers<[1], [0], [0], [1], [0, 0, 1, 1], [], []>} : vector<8x32xbf16>, vector<32x128xbf16>, vector<8x128xf32> -> vector<8x128xf32>
    %90 = vector.broadcast %17 : vector<1x128xf32> to vector<8x128xf32>
    %91 = arith.addf %89, %90 : vector<8x128xf32>
    %cst_36 = arith.constant dense<0.000000e+00> : vector<8x128xf32>
    %92 = tpu.matmul %58, %16, %cst_36 {dimension_numbers = #tpu.dot_dimension_numbers<[1], [0], [0], [1], [0, 0, 1, 1], [], []>} : vector<8x32xbf16>, vector<32x128xbf16>, vector<8x128xf32> -> vector<8x128xf32>
    %93 = vector.extract_strided_slice %91 {offsets = [0, 0], sizes = [8, 32], strides = [1, 1]} : vector<8x128xf32> to vector<8x32xf32>
    %94 = vector.extract_strided_slice %92 {offsets = [0, 0], sizes = [8, 32], strides = [1, 1]} : vector<8x128xf32> to vector<8x32xf32>
    %95 = arith.addf %93, %94 : vector<8x32xf32>
    %96 = arith.negf %95 : vector<8x32xf32>
    %97 = math.exp %96 : vector<8x32xf32>
    %cst_37 = arith.constant 1.000000e+00 : f32
    %98 = vector.broadcast %cst_37 : f32 to vector<8x32xf32>
    %99 = arith.addf %98, %97 : vector<8x32xf32>
    %100 = arith.divf %98, %99 : vector<8x32xf32>
    %101 = vector.extract_strided_slice %91 {offsets = [0, 32], sizes = [8, 32], strides = [1, 1]} : vector<8x128xf32> to vector<8x32xf32>
    %102 = vector.extract_strided_slice %92 {offsets = [0, 32], sizes = [8, 32], strides = [1, 1]} : vector<8x128xf32> to vector<8x32xf32>
    %103 = arith.addf %101, %102 : vector<8x32xf32>
    %104 = arith.negf %103 : vector<8x32xf32>
    %105 = math.exp %104 : vector<8x32xf32>
    %cst_38 = arith.constant 1.000000e+00 : f32
    %106 = vector.broadcast %cst_38 : f32 to vector<8x32xf32>
    %107 = arith.addf %106, %105 : vector<8x32xf32>
    %108 = arith.divf %106, %107 : vector<8x32xf32>
    %109 = vector.extract_strided_slice %91 {offsets = [0, 64], sizes = [8, 32], strides = [1, 1]} : vector<8x128xf32> to vector<8x32xf32>
    %110 = vector.extract_strided_slice %92 {offsets = [0, 64], sizes = [8, 32], strides = [1, 1]} : vector<8x128xf32> to vector<8x32xf32>
    %111 = arith.addf %110, %23 : vector<8x32xf32>
    %112 = arith.mulf %100, %111 : vector<8x32xf32>
    %113 = arith.addf %109, %112 : vector<8x32xf32>
    %114 = math.tanh %113 : vector<8x32xf32>
    %cst_39 = arith.constant 1.000000e+00 : f32
    %115 = vector.broadcast %cst_39 : f32 to vector<8x32xf32>
    %116 = arith.subf %115, %108 : vector<8x32xf32>
    %117 = arith.mulf %116, %114 : vector<8x32xf32>
    %118 = arith.mulf %108, %25 : vector<8x32xf32>
    %119 = arith.addf %117, %118 : vector<8x32xf32>
    %120 = arith.truncf %88 : vector<8x32xf32> to vector<8x32xbf16>
    %121 = arith.truncf %119 : vector<8x32xf32> to vector<8x32xbf16>
    %c2 = arith.constant 2 : index
    %c0_40 = arith.constant 0 : index
    %c0_41 = arith.constant 0 : index
    %122 = vector.load %arg10[%c2, %c0_40, %c0_41] : memref<8x8x128xf32, #tpu.memory_space<vmem>>, vector<1x8x128xf32>
    %123 = vector.shape_cast %122 : vector<1x8x128xf32> to vector<8x128xf32>
    %cst_42 = arith.constant dense<0.000000e+00> : vector<8x128xf32>
    %124 = tpu.matmul %120, %15, %cst_42 {dimension_numbers = #tpu.dot_dimension_numbers<[1], [0], [0], [1], [0, 0, 1, 1], [], []>} : vector<8x32xbf16>, vector<32x128xbf16>, vector<8x128xf32> -> vector<8x128xf32>
    %125 = vector.extract_strided_slice %123 {offsets = [0, 0], sizes = [8, 32], strides = [1, 1]} : vector<8x128xf32> to vector<8x32xf32>
    %126 = vector.extract_strided_slice %124 {offsets = [0, 0], sizes = [8, 32], strides = [1, 1]} : vector<8x128xf32> to vector<8x32xf32>
    %127 = arith.addf %125, %126 : vector<8x32xf32>
    %128 = arith.negf %127 : vector<8x32xf32>
    %129 = math.exp %128 : vector<8x32xf32>
    %cst_43 = arith.constant 1.000000e+00 : f32
    %130 = vector.broadcast %cst_43 : f32 to vector<8x32xf32>
    %131 = arith.addf %130, %129 : vector<8x32xf32>
    %132 = arith.divf %130, %131 : vector<8x32xf32>
    %133 = vector.extract_strided_slice %123 {offsets = [0, 32], sizes = [8, 32], strides = [1, 1]} : vector<8x128xf32> to vector<8x32xf32>
    %134 = vector.extract_strided_slice %124 {offsets = [0, 32], sizes = [8, 32], strides = [1, 1]} : vector<8x128xf32> to vector<8x32xf32>
    %135 = arith.addf %133, %134 : vector<8x32xf32>
    %136 = arith.negf %135 : vector<8x32xf32>
    %137 = math.exp %136 : vector<8x32xf32>
    %cst_44 = arith.constant 1.000000e+00 : f32
    %138 = vector.broadcast %cst_44 : f32 to vector<8x32xf32>
    %139 = arith.addf %138, %137 : vector<8x32xf32>
    %140 = arith.divf %138, %139 : vector<8x32xf32>
    %141 = vector.extract_strided_slice %123 {offsets = [0, 64], sizes = [8, 32], strides = [1, 1]} : vector<8x128xf32> to vector<8x32xf32>
    %142 = vector.extract_strided_slice %124 {offsets = [0, 64], sizes = [8, 32], strides = [1, 1]} : vector<8x128xf32> to vector<8x32xf32>
    %143 = arith.addf %142, %20 : vector<8x32xf32>
    %144 = arith.mulf %132, %143 : vector<8x32xf32>
    %145 = arith.addf %141, %144 : vector<8x32xf32>
    %146 = math.tanh %145 : vector<8x32xf32>
    %cst_45 = arith.constant 1.000000e+00 : f32
    %147 = vector.broadcast %cst_45 : f32 to vector<8x32xf32>
    %148 = arith.subf %147, %140 : vector<8x32xf32>
    %149 = arith.mulf %148, %146 : vector<8x32xf32>
    %150 = arith.mulf %140, %88 : vector<8x32xf32>
    %151 = arith.addf %149, %150 : vector<8x32xf32>
    %cst_46 = arith.constant dense<0.000000e+00> : vector<8x128xf32>
    %152 = tpu.matmul %120, %14, %cst_46 {dimension_numbers = #tpu.dot_dimension_numbers<[1], [0], [0], [1], [0, 0, 1, 1], [], []>} : vector<8x32xbf16>, vector<32x128xbf16>, vector<8x128xf32> -> vector<8x128xf32>
    %153 = vector.broadcast %17 : vector<1x128xf32> to vector<8x128xf32>
    %154 = arith.addf %152, %153 : vector<8x128xf32>
    %cst_47 = arith.constant dense<0.000000e+00> : vector<8x128xf32>
    %155 = tpu.matmul %121, %16, %cst_47 {dimension_numbers = #tpu.dot_dimension_numbers<[1], [0], [0], [1], [0, 0, 1, 1], [], []>} : vector<8x32xbf16>, vector<32x128xbf16>, vector<8x128xf32> -> vector<8x128xf32>
    %156 = vector.extract_strided_slice %154 {offsets = [0, 0], sizes = [8, 32], strides = [1, 1]} : vector<8x128xf32> to vector<8x32xf32>
    %157 = vector.extract_strided_slice %155 {offsets = [0, 0], sizes = [8, 32], strides = [1, 1]} : vector<8x128xf32> to vector<8x32xf32>
    %158 = arith.addf %156, %157 : vector<8x32xf32>
    %159 = arith.negf %158 : vector<8x32xf32>
    %160 = math.exp %159 : vector<8x32xf32>
    %cst_48 = arith.constant 1.000000e+00 : f32
    %161 = vector.broadcast %cst_48 : f32 to vector<8x32xf32>
    %162 = arith.addf %161, %160 : vector<8x32xf32>
    %163 = arith.divf %161, %162 : vector<8x32xf32>
    %164 = vector.extract_strided_slice %154 {offsets = [0, 32], sizes = [8, 32], strides = [1, 1]} : vector<8x128xf32> to vector<8x32xf32>
    %165 = vector.extract_strided_slice %155 {offsets = [0, 32], sizes = [8, 32], strides = [1, 1]} : vector<8x128xf32> to vector<8x32xf32>
    %166 = arith.addf %164, %165 : vector<8x32xf32>
    %167 = arith.negf %166 : vector<8x32xf32>
    %168 = math.exp %167 : vector<8x32xf32>
    %cst_49 = arith.constant 1.000000e+00 : f32
    %169 = vector.broadcast %cst_49 : f32 to vector<8x32xf32>
    %170 = arith.addf %169, %168 : vector<8x32xf32>
    %171 = arith.divf %169, %170 : vector<8x32xf32>
    %172 = vector.extract_strided_slice %154 {offsets = [0, 64], sizes = [8, 32], strides = [1, 1]} : vector<8x128xf32> to vector<8x32xf32>
    %173 = vector.extract_strided_slice %155 {offsets = [0, 64], sizes = [8, 32], strides = [1, 1]} : vector<8x128xf32> to vector<8x32xf32>
    %174 = arith.addf %173, %23 : vector<8x32xf32>
    %175 = arith.mulf %163, %174 : vector<8x32xf32>
    %176 = arith.addf %172, %175 : vector<8x32xf32>
    %177 = math.tanh %176 : vector<8x32xf32>
    %cst_50 = arith.constant 1.000000e+00 : f32
    %178 = vector.broadcast %cst_50 : f32 to vector<8x32xf32>
    %179 = arith.subf %178, %171 : vector<8x32xf32>
    %180 = arith.mulf %179, %177 : vector<8x32xf32>
    %181 = arith.mulf %171, %119 : vector<8x32xf32>
    %182 = arith.addf %180, %181 : vector<8x32xf32>
    %183 = arith.truncf %151 : vector<8x32xf32> to vector<8x32xbf16>
    %184 = arith.truncf %182 : vector<8x32xf32> to vector<8x32xbf16>
    %c3 = arith.constant 3 : index
    %c0_51 = arith.constant 0 : index
    %c0_52 = arith.constant 0 : index
    %185 = vector.load %arg10[%c3, %c0_51, %c0_52] : memref<8x8x128xf32, #tpu.memory_space<vmem>>, vector<1x8x128xf32>
    %186 = vector.shape_cast %185 : vector<1x8x128xf32> to vector<8x128xf32>
    %cst_53 = arith.constant dense<0.000000e+00> : vector<8x128xf32>
    %187 = tpu.matmul %183, %15, %cst_53 {dimension_numbers = #tpu.dot_dimension_numbers<[1], [0], [0], [1], [0, 0, 1, 1], [], []>} : vector<8x32xbf16>, vector<32x128xbf16>, vector<8x128xf32> -> vector<8x128xf32>
    %188 = vector.extract_strided_slice %186 {offsets = [0, 0], sizes = [8, 32], strides = [1, 1]} : vector<8x128xf32> to vector<8x32xf32>
    %189 = vector.extract_strided_slice %187 {offsets = [0, 0], sizes = [8, 32], strides = [1, 1]} : vector<8x128xf32> to vector<8x32xf32>
    %190 = arith.addf %188, %189 : vector<8x32xf32>
    %191 = arith.negf %190 : vector<8x32xf32>
    %192 = math.exp %191 : vector<8x32xf32>
    %cst_54 = arith.constant 1.000000e+00 : f32
    %193 = vector.broadcast %cst_54 : f32 to vector<8x32xf32>
    %194 = arith.addf %193, %192 : vector<8x32xf32>
    %195 = arith.divf %193, %194 : vector<8x32xf32>
    %196 = vector.extract_strided_slice %186 {offsets = [0, 32], sizes = [8, 32], strides = [1, 1]} : vector<8x128xf32> to vector<8x32xf32>
    %197 = vector.extract_strided_slice %187 {offsets = [0, 32], sizes = [8, 32], strides = [1, 1]} : vector<8x128xf32> to vector<8x32xf32>
    %198 = arith.addf %196, %197 : vector<8x32xf32>
    %199 = arith.negf %198 : vector<8x32xf32>
    %200 = math.exp %199 : vector<8x32xf32>
    %cst_55 = arith.constant 1.000000e+00 : f32
    %201 = vector.broadcast %cst_55 : f32 to vector<8x32xf32>
    %202 = arith.addf %201, %200 : vector<8x32xf32>
    %203 = arith.divf %201, %202 : vector<8x32xf32>
    %204 = vector.extract_strided_slice %186 {offsets = [0, 64], sizes = [8, 32], strides = [1, 1]} : vector<8x128xf32> to vector<8x32xf32>
    %205 = vector.extract_strided_slice %187 {offsets = [0, 64], sizes = [8, 32], strides = [1, 1]} : vector<8x128xf32> to vector<8x32xf32>
    %206 = arith.addf %205, %20 : vector<8x32xf32>
    %207 = arith.mulf %195, %206 : vector<8x32xf32>
    %208 = arith.addf %204, %207 : vector<8x32xf32>
    %209 = math.tanh %208 : vector<8x32xf32>
    %cst_56 = arith.constant 1.000000e+00 : f32
    %210 = vector.broadcast %cst_56 : f32 to vector<8x32xf32>
    %211 = arith.subf %210, %203 : vector<8x32xf32>
    %212 = arith.mulf %211, %209 : vector<8x32xf32>
    %213 = arith.mulf %203, %151 : vector<8x32xf32>
    %214 = arith.addf %212, %213 : vector<8x32xf32>
    %cst_57 = arith.constant dense<0.000000e+00> : vector<8x128xf32>
    %215 = tpu.matmul %183, %14, %cst_57 {dimension_numbers = #tpu.dot_dimension_numbers<[1], [0], [0], [1], [0, 0, 1, 1], [], []>} : vector<8x32xbf16>, vector<32x128xbf16>, vector<8x128xf32> -> vector<8x128xf32>
    %216 = vector.broadcast %17 : vector<1x128xf32> to vector<8x128xf32>
    %217 = arith.addf %215, %216 : vector<8x128xf32>
    %cst_58 = arith.constant dense<0.000000e+00> : vector<8x128xf32>
    %218 = tpu.matmul %184, %16, %cst_58 {dimension_numbers = #tpu.dot_dimension_numbers<[1], [0], [0], [1], [0, 0, 1, 1], [], []>} : vector<8x32xbf16>, vector<32x128xbf16>, vector<8x128xf32> -> vector<8x128xf32>
    %219 = vector.extract_strided_slice %217 {offsets = [0, 0], sizes = [8, 32], strides = [1, 1]} : vector<8x128xf32> to vector<8x32xf32>
    %220 = vector.extract_strided_slice %218 {offsets = [0, 0], sizes = [8, 32], strides = [1, 1]} : vector<8x128xf32> to vector<8x32xf32>
    %221 = arith.addf %219, %220 : vector<8x32xf32>
    %222 = arith.negf %221 : vector<8x32xf32>
    %223 = math.exp %222 : vector<8x32xf32>
    %cst_59 = arith.constant 1.000000e+00 : f32
    %224 = vector.broadcast %cst_59 : f32 to vector<8x32xf32>
    %225 = arith.addf %224, %223 : vector<8x32xf32>
    %226 = arith.divf %224, %225 : vector<8x32xf32>
    %227 = vector.extract_strided_slice %217 {offsets = [0, 32], sizes = [8, 32], strides = [1, 1]} : vector<8x128xf32> to vector<8x32xf32>
    %228 = vector.extract_strided_slice %218 {offsets = [0, 32], sizes = [8, 32], strides = [1, 1]} : vector<8x128xf32> to vector<8x32xf32>
    %229 = arith.addf %227, %228 : vector<8x32xf32>
    %230 = arith.negf %229 : vector<8x32xf32>
    %231 = math.exp %230 : vector<8x32xf32>
    %cst_60 = arith.constant 1.000000e+00 : f32
    %232 = vector.broadcast %cst_60 : f32 to vector<8x32xf32>
    %233 = arith.addf %232, %231 : vector<8x32xf32>
    %234 = arith.divf %232, %233 : vector<8x32xf32>
    %235 = vector.extract_strided_slice %217 {offsets = [0, 64], sizes = [8, 32], strides = [1, 1]} : vector<8x128xf32> to vector<8x32xf32>
    %236 = vector.extract_strided_slice %218 {offsets = [0, 64], sizes = [8, 32], strides = [1, 1]} : vector<8x128xf32> to vector<8x32xf32>
    %237 = arith.addf %236, %23 : vector<8x32xf32>
    %238 = arith.mulf %226, %237 : vector<8x32xf32>
    %239 = arith.addf %235, %238 : vector<8x32xf32>
    %240 = math.tanh %239 : vector<8x32xf32>
    %cst_61 = arith.constant 1.000000e+00 : f32
    %241 = vector.broadcast %cst_61 : f32 to vector<8x32xf32>
    %242 = arith.subf %241, %234 : vector<8x32xf32>
    %243 = arith.mulf %242, %240 : vector<8x32xf32>
    %244 = arith.mulf %234, %182 : vector<8x32xf32>
    %245 = arith.addf %243, %244 : vector<8x32xf32>
    %246 = arith.truncf %214 : vector<8x32xf32> to vector<8x32xbf16>
    %247 = arith.truncf %245 : vector<8x32xf32> to vector<8x32xbf16>
    %c4 = arith.constant 4 : index
    %c0_62 = arith.constant 0 : index
    %c0_63 = arith.constant 0 : index
    %248 = vector.load %arg10[%c4, %c0_62, %c0_63] : memref<8x8x128xf32, #tpu.memory_space<vmem>>, vector<1x8x128xf32>
    %249 = vector.shape_cast %248 : vector<1x8x128xf32> to vector<8x128xf32>
    %cst_64 = arith.constant dense<0.000000e+00> : vector<8x128xf32>
    %250 = tpu.matmul %246, %15, %cst_64 {dimension_numbers = #tpu.dot_dimension_numbers<[1], [0], [0], [1], [0, 0, 1, 1], [], []>} : vector<8x32xbf16>, vector<32x128xbf16>, vector<8x128xf32> -> vector<8x128xf32>
    %251 = vector.extract_strided_slice %249 {offsets = [0, 0], sizes = [8, 32], strides = [1, 1]} : vector<8x128xf32> to vector<8x32xf32>
    %252 = vector.extract_strided_slice %250 {offsets = [0, 0], sizes = [8, 32], strides = [1, 1]} : vector<8x128xf32> to vector<8x32xf32>
    %253 = arith.addf %251, %252 : vector<8x32xf32>
    %254 = arith.negf %253 : vector<8x32xf32>
    %255 = math.exp %254 : vector<8x32xf32>
    %cst_65 = arith.constant 1.000000e+00 : f32
    %256 = vector.broadcast %cst_65 : f32 to vector<8x32xf32>
    %257 = arith.addf %256, %255 : vector<8x32xf32>
    %258 = arith.divf %256, %257 : vector<8x32xf32>
    %259 = vector.extract_strided_slice %249 {offsets = [0, 32], sizes = [8, 32], strides = [1, 1]} : vector<8x128xf32> to vector<8x32xf32>
    %260 = vector.extract_strided_slice %250 {offsets = [0, 32], sizes = [8, 32], strides = [1, 1]} : vector<8x128xf32> to vector<8x32xf32>
    %261 = arith.addf %259, %260 : vector<8x32xf32>
    %262 = arith.negf %261 : vector<8x32xf32>
    %263 = math.exp %262 : vector<8x32xf32>
    %cst_66 = arith.constant 1.000000e+00 : f32
    %264 = vector.broadcast %cst_66 : f32 to vector<8x32xf32>
    %265 = arith.addf %264, %263 : vector<8x32xf32>
    %266 = arith.divf %264, %265 : vector<8x32xf32>
    %267 = vector.extract_strided_slice %249 {offsets = [0, 64], sizes = [8, 32], strides = [1, 1]} : vector<8x128xf32> to vector<8x32xf32>
    %268 = vector.extract_strided_slice %250 {offsets = [0, 64], sizes = [8, 32], strides = [1, 1]} : vector<8x128xf32> to vector<8x32xf32>
    %269 = arith.addf %268, %20 : vector<8x32xf32>
    %270 = arith.mulf %258, %269 : vector<8x32xf32>
    %271 = arith.addf %267, %270 : vector<8x32xf32>
    %272 = math.tanh %271 : vector<8x32xf32>
    %cst_67 = arith.constant 1.000000e+00 : f32
    %273 = vector.broadcast %cst_67 : f32 to vector<8x32xf32>
    %274 = arith.subf %273, %266 : vector<8x32xf32>
    %275 = arith.mulf %274, %272 : vector<8x32xf32>
    %276 = arith.mulf %266, %214 : vector<8x32xf32>
    %277 = arith.addf %275, %276 : vector<8x32xf32>
    %cst_68 = arith.constant dense<0.000000e+00> : vector<8x128xf32>
    %278 = tpu.matmul %246, %14, %cst_68 {dimension_numbers = #tpu.dot_dimension_numbers<[1], [0], [0], [1], [0, 0, 1, 1], [], []>} : vector<8x32xbf16>, vector<32x128xbf16>, vector<8x128xf32> -> vector<8x128xf32>
    %279 = vector.broadcast %17 : vector<1x128xf32> to vector<8x128xf32>
    %280 = arith.addf %278, %279 : vector<8x128xf32>
    %cst_69 = arith.constant dense<0.000000e+00> : vector<8x128xf32>
    %281 = tpu.matmul %247, %16, %cst_69 {dimension_numbers = #tpu.dot_dimension_numbers<[1], [0], [0], [1], [0, 0, 1, 1], [], []>} : vector<8x32xbf16>, vector<32x128xbf16>, vector<8x128xf32> -> vector<8x128xf32>
    %282 = vector.extract_strided_slice %280 {offsets = [0, 0], sizes = [8, 32], strides = [1, 1]} : vector<8x128xf32> to vector<8x32xf32>
    %283 = vector.extract_strided_slice %281 {offsets = [0, 0], sizes = [8, 32], strides = [1, 1]} : vector<8x128xf32> to vector<8x32xf32>
    %284 = arith.addf %282, %283 : vector<8x32xf32>
    %285 = arith.negf %284 : vector<8x32xf32>
    %286 = math.exp %285 : vector<8x32xf32>
    %cst_70 = arith.constant 1.000000e+00 : f32
    %287 = vector.broadcast %cst_70 : f32 to vector<8x32xf32>
    %288 = arith.addf %287, %286 : vector<8x32xf32>
    %289 = arith.divf %287, %288 : vector<8x32xf32>
    %290 = vector.extract_strided_slice %280 {offsets = [0, 32], sizes = [8, 32], strides = [1, 1]} : vector<8x128xf32> to vector<8x32xf32>
    %291 = vector.extract_strided_slice %281 {offsets = [0, 32], sizes = [8, 32], strides = [1, 1]} : vector<8x128xf32> to vector<8x32xf32>
    %292 = arith.addf %290, %291 : vector<8x32xf32>
    %293 = arith.negf %292 : vector<8x32xf32>
    %294 = math.exp %293 : vector<8x32xf32>
    %cst_71 = arith.constant 1.000000e+00 : f32
    %295 = vector.broadcast %cst_71 : f32 to vector<8x32xf32>
    %296 = arith.addf %295, %294 : vector<8x32xf32>
    %297 = arith.divf %295, %296 : vector<8x32xf32>
    %298 = vector.extract_strided_slice %280 {offsets = [0, 64], sizes = [8, 32], strides = [1, 1]} : vector<8x128xf32> to vector<8x32xf32>
    %299 = vector.extract_strided_slice %281 {offsets = [0, 64], sizes = [8, 32], strides = [1, 1]} : vector<8x128xf32> to vector<8x32xf32>
    %300 = arith.addf %299, %23 : vector<8x32xf32>
    %301 = arith.mulf %289, %300 : vector<8x32xf32>
    %302 = arith.addf %298, %301 : vector<8x32xf32>
    %303 = math.tanh %302 : vector<8x32xf32>
    %cst_72 = arith.constant 1.000000e+00 : f32
    %304 = vector.broadcast %cst_72 : f32 to vector<8x32xf32>
    %305 = arith.subf %304, %297 : vector<8x32xf32>
    %306 = arith.mulf %305, %303 : vector<8x32xf32>
    %307 = arith.mulf %297, %245 : vector<8x32xf32>
    %308 = arith.addf %306, %307 : vector<8x32xf32>
    %309 = arith.truncf %277 : vector<8x32xf32> to vector<8x32xbf16>
    %310 = arith.truncf %308 : vector<8x32xf32> to vector<8x32xbf16>
    %c5 = arith.constant 5 : index
    %c0_73 = arith.constant 0 : index
    %c0_74 = arith.constant 0 : index
    %311 = vector.load %arg10[%c5, %c0_73, %c0_74] : memref<8x8x128xf32, #tpu.memory_space<vmem>>, vector<1x8x128xf32>
    %312 = vector.shape_cast %311 : vector<1x8x128xf32> to vector<8x128xf32>
    %cst_75 = arith.constant dense<0.000000e+00> : vector<8x128xf32>
    %313 = tpu.matmul %309, %15, %cst_75 {dimension_numbers = #tpu.dot_dimension_numbers<[1], [0], [0], [1], [0, 0, 1, 1], [], []>} : vector<8x32xbf16>, vector<32x128xbf16>, vector<8x128xf32> -> vector<8x128xf32>
    %314 = vector.extract_strided_slice %312 {offsets = [0, 0], sizes = [8, 32], strides = [1, 1]} : vector<8x128xf32> to vector<8x32xf32>
    %315 = vector.extract_strided_slice %313 {offsets = [0, 0], sizes = [8, 32], strides = [1, 1]} : vector<8x128xf32> to vector<8x32xf32>
    %316 = arith.addf %314, %315 : vector<8x32xf32>
    %317 = arith.negf %316 : vector<8x32xf32>
    %318 = math.exp %317 : vector<8x32xf32>
    %cst_76 = arith.constant 1.000000e+00 : f32
    %319 = vector.broadcast %cst_76 : f32 to vector<8x32xf32>
    %320 = arith.addf %319, %318 : vector<8x32xf32>
    %321 = arith.divf %319, %320 : vector<8x32xf32>
    %322 = vector.extract_strided_slice %312 {offsets = [0, 32], sizes = [8, 32], strides = [1, 1]} : vector<8x128xf32> to vector<8x32xf32>
    %323 = vector.extract_strided_slice %313 {offsets = [0, 32], sizes = [8, 32], strides = [1, 1]} : vector<8x128xf32> to vector<8x32xf32>
    %324 = arith.addf %322, %323 : vector<8x32xf32>
    %325 = arith.negf %324 : vector<8x32xf32>
    %326 = math.exp %325 : vector<8x32xf32>
    %cst_77 = arith.constant 1.000000e+00 : f32
    %327 = vector.broadcast %cst_77 : f32 to vector<8x32xf32>
    %328 = arith.addf %327, %326 : vector<8x32xf32>
    %329 = arith.divf %327, %328 : vector<8x32xf32>
    %330 = vector.extract_strided_slice %312 {offsets = [0, 64], sizes = [8, 32], strides = [1, 1]} : vector<8x128xf32> to vector<8x32xf32>
    %331 = vector.extract_strided_slice %313 {offsets = [0, 64], sizes = [8, 32], strides = [1, 1]} : vector<8x128xf32> to vector<8x32xf32>
    %332 = arith.addf %331, %20 : vector<8x32xf32>
    %333 = arith.mulf %321, %332 : vector<8x32xf32>
    %334 = arith.addf %330, %333 : vector<8x32xf32>
    %335 = math.tanh %334 : vector<8x32xf32>
    %cst_78 = arith.constant 1.000000e+00 : f32
    %336 = vector.broadcast %cst_78 : f32 to vector<8x32xf32>
    %337 = arith.subf %336, %329 : vector<8x32xf32>
    %338 = arith.mulf %337, %335 : vector<8x32xf32>
    %339 = arith.mulf %329, %277 : vector<8x32xf32>
    %340 = arith.addf %338, %339 : vector<8x32xf32>
    %cst_79 = arith.constant dense<0.000000e+00> : vector<8x128xf32>
    %341 = tpu.matmul %309, %14, %cst_79 {dimension_numbers = #tpu.dot_dimension_numbers<[1], [0], [0], [1], [0, 0, 1, 1], [], []>} : vector<8x32xbf16>, vector<32x128xbf16>, vector<8x128xf32> -> vector<8x128xf32>
    %342 = vector.broadcast %17 : vector<1x128xf32> to vector<8x128xf32>
    %343 = arith.addf %341, %342 : vector<8x128xf32>
    %cst_80 = arith.constant dense<0.000000e+00> : vector<8x128xf32>
    %344 = tpu.matmul %310, %16, %cst_80 {dimension_numbers = #tpu.dot_dimension_numbers<[1], [0], [0], [1], [0, 0, 1, 1], [], []>} : vector<8x32xbf16>, vector<32x128xbf16>, vector<8x128xf32> -> vector<8x128xf32>
    %345 = vector.extract_strided_slice %343 {offsets = [0, 0], sizes = [8, 32], strides = [1, 1]} : vector<8x128xf32> to vector<8x32xf32>
    %346 = vector.extract_strided_slice %344 {offsets = [0, 0], sizes = [8, 32], strides = [1, 1]} : vector<8x128xf32> to vector<8x32xf32>
    %347 = arith.addf %345, %346 : vector<8x32xf32>
    %348 = arith.negf %347 : vector<8x32xf32>
    %349 = math.exp %348 : vector<8x32xf32>
    %cst_81 = arith.constant 1.000000e+00 : f32
    %350 = vector.broadcast %cst_81 : f32 to vector<8x32xf32>
    %351 = arith.addf %350, %349 : vector<8x32xf32>
    %352 = arith.divf %350, %351 : vector<8x32xf32>
    %353 = vector.extract_strided_slice %343 {offsets = [0, 32], sizes = [8, 32], strides = [1, 1]} : vector<8x128xf32> to vector<8x32xf32>
    %354 = vector.extract_strided_slice %344 {offsets = [0, 32], sizes = [8, 32], strides = [1, 1]} : vector<8x128xf32> to vector<8x32xf32>
    %355 = arith.addf %353, %354 : vector<8x32xf32>
    %356 = arith.negf %355 : vector<8x32xf32>
    %357 = math.exp %356 : vector<8x32xf32>
    %cst_82 = arith.constant 1.000000e+00 : f32
    %358 = vector.broadcast %cst_82 : f32 to vector<8x32xf32>
    %359 = arith.addf %358, %357 : vector<8x32xf32>
    %360 = arith.divf %358, %359 : vector<8x32xf32>
    %361 = vector.extract_strided_slice %343 {offsets = [0, 64], sizes = [8, 32], strides = [1, 1]} : vector<8x128xf32> to vector<8x32xf32>
    %362 = vector.extract_strided_slice %344 {offsets = [0, 64], sizes = [8, 32], strides = [1, 1]} : vector<8x128xf32> to vector<8x32xf32>
    %363 = arith.addf %362, %23 : vector<8x32xf32>
    %364 = arith.mulf %352, %363 : vector<8x32xf32>
    %365 = arith.addf %361, %364 : vector<8x32xf32>
    %366 = math.tanh %365 : vector<8x32xf32>
    %cst_83 = arith.constant 1.000000e+00 : f32
    %367 = vector.broadcast %cst_83 : f32 to vector<8x32xf32>
    %368 = arith.subf %367, %360 : vector<8x32xf32>
    %369 = arith.mulf %368, %366 : vector<8x32xf32>
    %370 = arith.mulf %360, %308 : vector<8x32xf32>
    %371 = arith.addf %369, %370 : vector<8x32xf32>
    %372 = arith.truncf %340 : vector<8x32xf32> to vector<8x32xbf16>
    %373 = arith.truncf %371 : vector<8x32xf32> to vector<8x32xbf16>
    %c6 = arith.constant 6 : index
    %c0_84 = arith.constant 0 : index
    %c0_85 = arith.constant 0 : index
    %374 = vector.load %arg10[%c6, %c0_84, %c0_85] : memref<8x8x128xf32, #tpu.memory_space<vmem>>, vector<1x8x128xf32>
    %375 = vector.shape_cast %374 : vector<1x8x128xf32> to vector<8x128xf32>
    %cst_86 = arith.constant dense<0.000000e+00> : vector<8x128xf32>
    %376 = tpu.matmul %372, %15, %cst_86 {dimension_numbers = #tpu.dot_dimension_numbers<[1], [0], [0], [1], [0, 0, 1, 1], [], []>} : vector<8x32xbf16>, vector<32x128xbf16>, vector<8x128xf32> -> vector<8x128xf32>
    %377 = vector.extract_strided_slice %375 {offsets = [0, 0], sizes = [8, 32], strides = [1, 1]} : vector<8x128xf32> to vector<8x32xf32>
    %378 = vector.extract_strided_slice %376 {offsets = [0, 0], sizes = [8, 32], strides = [1, 1]} : vector<8x128xf32> to vector<8x32xf32>
    %379 = arith.addf %377, %378 : vector<8x32xf32>
    %380 = arith.negf %379 : vector<8x32xf32>
    %381 = math.exp %380 : vector<8x32xf32>
    %cst_87 = arith.constant 1.000000e+00 : f32
    %382 = vector.broadcast %cst_87 : f32 to vector<8x32xf32>
    %383 = arith.addf %382, %381 : vector<8x32xf32>
    %384 = arith.divf %382, %383 : vector<8x32xf32>
    %385 = vector.extract_strided_slice %375 {offsets = [0, 32], sizes = [8, 32], strides = [1, 1]} : vector<8x128xf32> to vector<8x32xf32>
    %386 = vector.extract_strided_slice %376 {offsets = [0, 32], sizes = [8, 32], strides = [1, 1]} : vector<8x128xf32> to vector<8x32xf32>
    %387 = arith.addf %385, %386 : vector<8x32xf32>
    %388 = arith.negf %387 : vector<8x32xf32>
    %389 = math.exp %388 : vector<8x32xf32>
    %cst_88 = arith.constant 1.000000e+00 : f32
    %390 = vector.broadcast %cst_88 : f32 to vector<8x32xf32>
    %391 = arith.addf %390, %389 : vector<8x32xf32>
    %392 = arith.divf %390, %391 : vector<8x32xf32>
    %393 = vector.extract_strided_slice %375 {offsets = [0, 64], sizes = [8, 32], strides = [1, 1]} : vector<8x128xf32> to vector<8x32xf32>
    %394 = vector.extract_strided_slice %376 {offsets = [0, 64], sizes = [8, 32], strides = [1, 1]} : vector<8x128xf32> to vector<8x32xf32>
    %395 = arith.addf %394, %20 : vector<8x32xf32>
    %396 = arith.mulf %384, %395 : vector<8x32xf32>
    %397 = arith.addf %393, %396 : vector<8x32xf32>
    %398 = math.tanh %397 : vector<8x32xf32>
    %cst_89 = arith.constant 1.000000e+00 : f32
    %399 = vector.broadcast %cst_89 : f32 to vector<8x32xf32>
    %400 = arith.subf %399, %392 : vector<8x32xf32>
    %401 = arith.mulf %400, %398 : vector<8x32xf32>
    %402 = arith.mulf %392, %340 : vector<8x32xf32>
    %403 = arith.addf %401, %402 : vector<8x32xf32>
    %cst_90 = arith.constant dense<0.000000e+00> : vector<8x128xf32>
    %404 = tpu.matmul %372, %14, %cst_90 {dimension_numbers = #tpu.dot_dimension_numbers<[1], [0], [0], [1], [0, 0, 1, 1], [], []>} : vector<8x32xbf16>, vector<32x128xbf16>, vector<8x128xf32> -> vector<8x128xf32>
    %405 = vector.broadcast %17 : vector<1x128xf32> to vector<8x128xf32>
    %406 = arith.addf %404, %405 : vector<8x128xf32>
    %cst_91 = arith.constant dense<0.000000e+00> : vector<8x128xf32>
    %407 = tpu.matmul %373, %16, %cst_91 {dimension_numbers = #tpu.dot_dimension_numbers<[1], [0], [0], [1], [0, 0, 1, 1], [], []>} : vector<8x32xbf16>, vector<32x128xbf16>, vector<8x128xf32> -> vector<8x128xf32>
    %408 = vector.extract_strided_slice %406 {offsets = [0, 0], sizes = [8, 32], strides = [1, 1]} : vector<8x128xf32> to vector<8x32xf32>
    %409 = vector.extract_strided_slice %407 {offsets = [0, 0], sizes = [8, 32], strides = [1, 1]} : vector<8x128xf32> to vector<8x32xf32>
    %410 = arith.addf %408, %409 : vector<8x32xf32>
    %411 = arith.negf %410 : vector<8x32xf32>
    %412 = math.exp %411 : vector<8x32xf32>
    %cst_92 = arith.constant 1.000000e+00 : f32
    %413 = vector.broadcast %cst_92 : f32 to vector<8x32xf32>
    %414 = arith.addf %413, %412 : vector<8x32xf32>
    %415 = arith.divf %413, %414 : vector<8x32xf32>
    %416 = vector.extract_strided_slice %406 {offsets = [0, 32], sizes = [8, 32], strides = [1, 1]} : vector<8x128xf32> to vector<8x32xf32>
    %417 = vector.extract_strided_slice %407 {offsets = [0, 32], sizes = [8, 32], strides = [1, 1]} : vector<8x128xf32> to vector<8x32xf32>
    %418 = arith.addf %416, %417 : vector<8x32xf32>
    %419 = arith.negf %418 : vector<8x32xf32>
    %420 = math.exp %419 : vector<8x32xf32>
    %cst_93 = arith.constant 1.000000e+00 : f32
    %421 = vector.broadcast %cst_93 : f32 to vector<8x32xf32>
    %422 = arith.addf %421, %420 : vector<8x32xf32>
    %423 = arith.divf %421, %422 : vector<8x32xf32>
    %424 = vector.extract_strided_slice %406 {offsets = [0, 64], sizes = [8, 32], strides = [1, 1]} : vector<8x128xf32> to vector<8x32xf32>
    %425 = vector.extract_strided_slice %407 {offsets = [0, 64], sizes = [8, 32], strides = [1, 1]} : vector<8x128xf32> to vector<8x32xf32>
    %426 = arith.addf %425, %23 : vector<8x32xf32>
    %427 = arith.mulf %415, %426 : vector<8x32xf32>
    %428 = arith.addf %424, %427 : vector<8x32xf32>
    %429 = math.tanh %428 : vector<8x32xf32>
    %cst_94 = arith.constant 1.000000e+00 : f32
    %430 = vector.broadcast %cst_94 : f32 to vector<8x32xf32>
    %431 = arith.subf %430, %423 : vector<8x32xf32>
    %432 = arith.mulf %431, %429 : vector<8x32xf32>
    %433 = arith.mulf %423, %371 : vector<8x32xf32>
    %434 = arith.addf %432, %433 : vector<8x32xf32>
    %435 = arith.truncf %403 : vector<8x32xf32> to vector<8x32xbf16>
    %436 = arith.truncf %434 : vector<8x32xf32> to vector<8x32xbf16>
    %c7 = arith.constant 7 : index
    %c0_95 = arith.constant 0 : index
    %c0_96 = arith.constant 0 : index
    %437 = vector.load %arg10[%c7, %c0_95, %c0_96] : memref<8x8x128xf32, #tpu.memory_space<vmem>>, vector<1x8x128xf32>
    %438 = vector.shape_cast %437 : vector<1x8x128xf32> to vector<8x128xf32>
    %cst_97 = arith.constant dense<0.000000e+00> : vector<8x128xf32>
    %439 = tpu.matmul %435, %15, %cst_97 {dimension_numbers = #tpu.dot_dimension_numbers<[1], [0], [0], [1], [0, 0, 1, 1], [], []>} : vector<8x32xbf16>, vector<32x128xbf16>, vector<8x128xf32> -> vector<8x128xf32>
    %440 = vector.extract_strided_slice %438 {offsets = [0, 0], sizes = [8, 32], strides = [1, 1]} : vector<8x128xf32> to vector<8x32xf32>
    %441 = vector.extract_strided_slice %439 {offsets = [0, 0], sizes = [8, 32], strides = [1, 1]} : vector<8x128xf32> to vector<8x32xf32>
    %442 = arith.addf %440, %441 : vector<8x32xf32>
    %443 = arith.negf %442 : vector<8x32xf32>
    %444 = math.exp %443 : vector<8x32xf32>
    %cst_98 = arith.constant 1.000000e+00 : f32
    %445 = vector.broadcast %cst_98 : f32 to vector<8x32xf32>
    %446 = arith.addf %445, %444 : vector<8x32xf32>
    %447 = arith.divf %445, %446 : vector<8x32xf32>
    %448 = vector.extract_strided_slice %438 {offsets = [0, 32], sizes = [8, 32], strides = [1, 1]} : vector<8x128xf32> to vector<8x32xf32>
    %449 = vector.extract_strided_slice %439 {offsets = [0, 32], sizes = [8, 32], strides = [1, 1]} : vector<8x128xf32> to vector<8x32xf32>
    %450 = arith.addf %448, %449 : vector<8x32xf32>
    %451 = arith.negf %450 : vector<8x32xf32>
    %452 = math.exp %451 : vector<8x32xf32>
    %cst_99 = arith.constant 1.000000e+00 : f32
    %453 = vector.broadcast %cst_99 : f32 to vector<8x32xf32>
    %454 = arith.addf %453, %452 : vector<8x32xf32>
    %455 = arith.divf %453, %454 : vector<8x32xf32>
    %456 = vector.extract_strided_slice %438 {offsets = [0, 64], sizes = [8, 32], strides = [1, 1]} : vector<8x128xf32> to vector<8x32xf32>
    %457 = vector.extract_strided_slice %439 {offsets = [0, 64], sizes = [8, 32], strides = [1, 1]} : vector<8x128xf32> to vector<8x32xf32>
    %458 = arith.addf %457, %20 : vector<8x32xf32>
    %459 = arith.mulf %447, %458 : vector<8x32xf32>
    %460 = arith.addf %456, %459 : vector<8x32xf32>
    %461 = math.tanh %460 : vector<8x32xf32>
    %cst_100 = arith.constant 1.000000e+00 : f32
    %462 = vector.broadcast %cst_100 : f32 to vector<8x32xf32>
    %463 = arith.subf %462, %455 : vector<8x32xf32>
    %464 = arith.mulf %463, %461 : vector<8x32xf32>
    %465 = arith.mulf %455, %403 : vector<8x32xf32>
    %466 = arith.addf %464, %465 : vector<8x32xf32>
    %cst_101 = arith.constant dense<0.000000e+00> : vector<8x128xf32>
    %467 = tpu.matmul %435, %14, %cst_101 {dimension_numbers = #tpu.dot_dimension_numbers<[1], [0], [0], [1], [0, 0, 1, 1], [], []>} : vector<8x32xbf16>, vector<32x128xbf16>, vector<8x128xf32> -> vector<8x128xf32>
    %468 = vector.broadcast %17 : vector<1x128xf32> to vector<8x128xf32>
    %469 = arith.addf %467, %468 : vector<8x128xf32>
    %cst_102 = arith.constant dense<0.000000e+00> : vector<8x128xf32>
    %470 = tpu.matmul %436, %16, %cst_102 {dimension_numbers = #tpu.dot_dimension_numbers<[1], [0], [0], [1], [0, 0, 1, 1], [], []>} : vector<8x32xbf16>, vector<32x128xbf16>, vector<8x128xf32> -> vector<8x128xf32>
    %471 = vector.extract_strided_slice %469 {offsets = [0, 0], sizes = [8, 32], strides = [1, 1]} : vector<8x128xf32> to vector<8x32xf32>
    %472 = vector.extract_strided_slice %470 {offsets = [0, 0], sizes = [8, 32], strides = [1, 1]} : vector<8x128xf32> to vector<8x32xf32>
    %473 = arith.addf %471, %472 : vector<8x32xf32>
    %474 = arith.negf %473 : vector<8x32xf32>
    %475 = math.exp %474 : vector<8x32xf32>
    %cst_103 = arith.constant 1.000000e+00 : f32
    %476 = vector.broadcast %cst_103 : f32 to vector<8x32xf32>
    %477 = arith.addf %476, %475 : vector<8x32xf32>
    %478 = arith.divf %476, %477 : vector<8x32xf32>
    %479 = vector.extract_strided_slice %469 {offsets = [0, 32], sizes = [8, 32], strides = [1, 1]} : vector<8x128xf32> to vector<8x32xf32>
    %480 = vector.extract_strided_slice %470 {offsets = [0, 32], sizes = [8, 32], strides = [1, 1]} : vector<8x128xf32> to vector<8x32xf32>
    %481 = arith.addf %479, %480 : vector<8x32xf32>
    %482 = arith.negf %481 : vector<8x32xf32>
    %483 = math.exp %482 : vector<8x32xf32>
    %cst_104 = arith.constant 1.000000e+00 : f32
    %484 = vector.broadcast %cst_104 : f32 to vector<8x32xf32>
    %485 = arith.addf %484, %483 : vector<8x32xf32>
    %486 = arith.divf %484, %485 : vector<8x32xf32>
    %487 = vector.extract_strided_slice %469 {offsets = [0, 64], sizes = [8, 32], strides = [1, 1]} : vector<8x128xf32> to vector<8x32xf32>
    %488 = vector.extract_strided_slice %470 {offsets = [0, 64], sizes = [8, 32], strides = [1, 1]} : vector<8x128xf32> to vector<8x32xf32>
    %489 = arith.addf %488, %23 : vector<8x32xf32>
    %490 = arith.mulf %478, %489 : vector<8x32xf32>
    %491 = arith.addf %487, %490 : vector<8x32xf32>
    %492 = math.tanh %491 : vector<8x32xf32>
    %cst_105 = arith.constant 1.000000e+00 : f32
    %493 = vector.broadcast %cst_105 : f32 to vector<8x32xf32>
    %494 = arith.subf %493, %486 : vector<8x32xf32>
    %495 = arith.mulf %494, %492 : vector<8x32xf32>
    %496 = arith.mulf %486, %434 : vector<8x32xf32>
    %497 = arith.addf %495, %496 : vector<8x32xf32>
    %498 = arith.truncf %466 : vector<8x32xf32> to vector<8x32xbf16>
    %499 = arith.truncf %497 : vector<8x32xf32> to vector<8x32xbf16>
    %cst_106 = arith.constant dense<0.000000e+00> : vector<8x128xf32>
    %500 = tpu.matmul %498, %14, %cst_106 {dimension_numbers = #tpu.dot_dimension_numbers<[1], [0], [0], [1], [0, 0, 1, 1], [], []>} : vector<8x32xbf16>, vector<32x128xbf16>, vector<8x128xf32> -> vector<8x128xf32>
    %501 = vector.broadcast %17 : vector<1x128xf32> to vector<8x128xf32>
    %502 = arith.addf %500, %501 : vector<8x128xf32>
    %cst_107 = arith.constant dense<0.000000e+00> : vector<8x128xf32>
    %503 = tpu.matmul %499, %16, %cst_107 {dimension_numbers = #tpu.dot_dimension_numbers<[1], [0], [0], [1], [0, 0, 1, 1], [], []>} : vector<8x32xbf16>, vector<32x128xbf16>, vector<8x128xf32> -> vector<8x128xf32>
    %504 = vector.extract_strided_slice %502 {offsets = [0, 0], sizes = [8, 32], strides = [1, 1]} : vector<8x128xf32> to vector<8x32xf32>
    %505 = vector.extract_strided_slice %503 {offsets = [0, 0], sizes = [8, 32], strides = [1, 1]} : vector<8x128xf32> to vector<8x32xf32>
    %506 = arith.addf %504, %505 : vector<8x32xf32>
    %507 = arith.negf %506 : vector<8x32xf32>
    %508 = math.exp %507 : vector<8x32xf32>
    %cst_108 = arith.constant 1.000000e+00 : f32
    %509 = vector.broadcast %cst_108 : f32 to vector<8x32xf32>
    %510 = arith.addf %509, %508 : vector<8x32xf32>
    %511 = arith.divf %509, %510 : vector<8x32xf32>
    %512 = vector.extract_strided_slice %502 {offsets = [0, 32], sizes = [8, 32], strides = [1, 1]} : vector<8x128xf32> to vector<8x32xf32>
    %513 = vector.extract_strided_slice %503 {offsets = [0, 32], sizes = [8, 32], strides = [1, 1]} : vector<8x128xf32> to vector<8x32xf32>
    %514 = arith.addf %512, %513 : vector<8x32xf32>
    %515 = arith.negf %514 : vector<8x32xf32>
    %516 = math.exp %515 : vector<8x32xf32>
    %cst_109 = arith.constant 1.000000e+00 : f32
    %517 = vector.broadcast %cst_109 : f32 to vector<8x32xf32>
    %518 = arith.addf %517, %516 : vector<8x32xf32>
    %519 = arith.divf %517, %518 : vector<8x32xf32>
    %520 = vector.extract_strided_slice %502 {offsets = [0, 64], sizes = [8, 32], strides = [1, 1]} : vector<8x128xf32> to vector<8x32xf32>
    %521 = vector.extract_strided_slice %503 {offsets = [0, 64], sizes = [8, 32], strides = [1, 1]} : vector<8x128xf32> to vector<8x32xf32>
    %522 = arith.addf %521, %23 : vector<8x32xf32>
    %523 = arith.mulf %511, %522 : vector<8x32xf32>
    %524 = arith.addf %520, %523 : vector<8x32xf32>
    %525 = math.tanh %524 : vector<8x32xf32>
    %cst_110 = arith.constant 1.000000e+00 : f32
    %526 = vector.broadcast %cst_110 : f32 to vector<8x32xf32>
    %527 = arith.subf %526, %519 : vector<8x32xf32>
    %528 = arith.mulf %527, %525 : vector<8x32xf32>
    %529 = arith.mulf %519, %497 : vector<8x32xf32>
    %530 = arith.addf %528, %529 : vector<8x32xf32>
    %c0_111 = arith.constant 0 : index
    %c0_112 = arith.constant 0 : index
    %531 = vector.load %arg9[%c0_111, %c0_112] : memref<8x32xf32, #tpu.memory_space<vmem>>, vector<8x32xf32>
    tpu.vector_store %arg9[%c0_111, %c0_112], %530 {strides = array<i32>} : memref<8x32xf32, #tpu.memory_space<vmem>>, vector<8x32xf32>,
    return
  }
}

</mosaic_0001>

<bundles_post_ra>
// kernel: tpu_custom_call.1
= control target key start
LH: loop header
LB: loop body
LE: loop exit
PB: predicated region body
PF: predicated region fallthrough
CT: control target
= control target key end

     0   :  { %14 = vsyncpa [#allocation4], 0  ;;  %s3049_s0 = inlined_call_operand.hbm [shape: s32[64,128], index: 0, kind: input, shape index: {}]   ;;  %s3050_s1 = inlined_call_operand.hbm [shape: bf16[128,128], index: 1, kind: input, shape index: {}]   ;;  %s3051_s2 = inlined_call_operand.hbm [shape: bf16[32,128], index: 2, kind: input, shape index: {}]   ;;  %s3052_s3 = inlined_call_operand.vmem [shape: f32[1,128], index: 3, kind: input, shape index: {}]   ;;  %s3053_s4 = inlined_call_operand.vmem [shape: f32[1,32], index: 4, kind: input, shape index: {}]   ;;  %s3054_s5 = inlined_call_operand.vmem [shape: bf16[32,128], index: 5, kind: input, shape index: {}]   ;;  %s3055_s6 = inlined_call_operand.hbm [shape: bf16[32,128], index: 6, kind: input, shape index: {}]   ;;  %s3056_s7 = inlined_call_operand.vmem [shape: f32[1,128], index: 7, kind: input, shape index: {}]   ;;  %s3057_s8 = inlined_call_operand.vmem [shape: f32[1,32], index: 8, kind: input, shape index: {}]   ;;  %s3058_s9 = inlined_call_operand.hbm [shape: f32[8,32], index: 9, kind: output, shape index: {}]  }
   0x1   :  { %15 = vsyncpa [#allocation7], 0 }
   0x2   :  { %16 = vsyncpa [#allocation10], 0 }
   0x3   :  { %17 = vsyncpa [#allocation5], 0  ;;  %s2510_s30 = smov [#allocation6]   ;;  %s2392_s13 = scalar_lea.hbm %s3050_s1, 1024 }
   0x4   :  { %s35_s10 = sshll.u32 %s2510_s30, 4  ;;  %p2393_p0 = scmp.ne.s32.totalorder %s3050_s1, %s2392_s13  ;;  %s36_s10 = int_to_ptr.vmem [resolvable:$true] %s35_s10 }
   0x5   :  { %p2396_p1 = scmp.lt.u32.totalorder %s2392_s13, %s3050_s1 }
   0x7   :  { %p2398_p2 = pnand %p2396_p1, %p2393_p0 }
   0x9   :  { %2401 = shalt.err (!%p2398_p2)
}
   0xa   :  { %s2402_s18 = scalar_lea.vmem %s36_s10, 1024  ;;  %p2407_p4 = scmp.lt.s32.totalorder %s36_s10, %s36_s10 }
   0xb   :  { %p2403_p3 = scmp.ne.s32.totalorder %s36_s10, %s2402_s18  ;;  %p2408_p5 = scmp.lt.s32.totalorder %s2402_s18, %s2402_s18 }
   0xd   :  { %p2409_p6 = por %p2408_p5, %p2407_p4 }
   0xf   :  { %p2410_p7 = pnand %p2409_p6, %p2403_p3 }
  0x11   :  { %2413 = shalt.err (!%p2410_p7)
}
  0x12   :  { %s2511_s19 = smov 64   ;;  %s2512_s20 = smov 4  }
  0x13   :  { %41 = dma.hbm_to_vmem [thread:$0]  %s3050_s1, 1024, %s36_s10, [#allocation7], %s2511_s19, %s2511_s19, %s2512_s20  }
  0x14   :  { %s2513_s23 = smov [#allocation3]   ;;  %s2414_s27 = scalar_lea.hbm %s3049_s0, 1024 }
  0x15   :  { %s23_s24 = sshll.u32 %s2513_s23, 4  ;;  %p2415_p8 = scmp.ne.s32.totalorder %s3049_s0, %s2414_s27  ;;  %s24_s24 = int_to_ptr.vmem [resolvable:$true] %s23_s24 }
  0x16   :  { %p2418_p9 = scmp.lt.u32.totalorder %s2414_s27, %s3049_s0 }
  0x18   :  { %p2420_p10 = pnand %p2418_p9, %p2415_p8 }
  0x1a   :  { %2423 = shalt.err (!%p2420_p10)
}
  0x1b   :  { %s2424_s12 = scalar_lea.vmem %s24_s24, 1024  ;;  %p2429_p12 = scmp.lt.s32.totalorder %s24_s24, %s24_s24 }
  0x1c   :  { %p2425_p11 = scmp.ne.s32.totalorder %s24_s24, %s2424_s12  ;;  %p2430_p13 = scmp.lt.s32.totalorder %s2424_s12, %s2424_s12 }
  0x1e   :  { %p2431_p0 = por %p2430_p13, %p2429_p12 }
  0x20   :  { %p2432_p1 = pnand %p2431_p0, %p2425_p11 }
  0x22   :  { %2435 = shalt.err (!%p2432_p1)
}
  0x23   :  { %s2514_s1 = smov 128   ;;  %s2515_s10 = smov 8  }
  0x24   :  { %29 = dma.hbm_to_vmem [thread:$0]  %s3049_s0, 1024, %s24_s24, [#allocation4], %s2514_s1, %s2514_s1, %s2515_s10  }
  0x25   :  { %s2516_s15 = smov [#allocation8]   ;;  %s2517_s17 = smov [#allocation9]  }
  0x26   :  { %s47_s16 = sshll.u32 %s2516_s15, 4  ;;  %s65_s18 = sshll.u32 %s2517_s17, 4  ;;  %s48_s16 = int_to_ptr.vmem [resolvable:$true] %s47_s16  ;;  %s2601_s18 = int_to_ptr.vmem [resolvable:$true] %s65_s18 }
  0x27   :  { %s2436_s23 = scalar_lea.hbm %s3051_s2, 256 }
  0x28   :  { %p2437_p2 = scmp.ne.s32.totalorder %s3051_s2, %s2436_s23  ;;  %p2440_p3 = scmp.lt.u32.totalorder %s2436_s23, %s3051_s2 }
  0x2a   :  { %p2442_p4 = pnand %p2440_p3, %p2437_p2 }
  0x2c   :  { %2445 = shalt.err (!%p2442_p4)
}
  0x2d   :  { %s2446_s0 = scalar_lea.vmem %s48_s16, 256  ;;  %p2451_p6 = scmp.lt.s32.totalorder %s48_s16, %s48_s16 }
  0x2e   :  { %p2447_p5 = scmp.ne.s32.totalorder %s48_s16, %s2446_s0  ;;  %p2452_p7 = scmp.lt.s32.totalorder %s2446_s0, %s2446_s0 }
  0x30   :  { %p2453_p8 = por %p2452_p7, %p2451_p6 }
  0x32   :  { %p2454_p9 = pnand %p2453_p8, %p2447_p5 }
  0x34   :  { %2457 = shalt.err (!%p2454_p9)
}
  0x35   :  { %53 = dma.hbm_to_vmem [thread:$0]  %s3051_s2, 256, %s48_s16, [#allocation7], %s2511_s19, %s2511_s19, %s2512_s20  }
  0x36   :  { %s2458_s12 = scalar_lea.hbm %s3055_s6, 256 }
  0x37   :  { %p2459_p10 = scmp.ne.s32.totalorder %s3055_s6, %s2458_s12  ;;  %p2462_p11 = scmp.lt.u32.totalorder %s2458_s12, %s3055_s6 }
  0x39   :  { %p2464_p12 = pnand %p2462_p11, %p2459_p10 }
  0x3b   :  { %2467 = shalt.err (!%p2464_p12)
}
  0x3c   :  { %s2468_s15 = scalar_lea.vmem %s2601_s18, 256  ;;  %p2473_p0 = scmp.lt.s32.totalorder %s2601_s18, %s2601_s18 }
  0x3d   :  { %p2469_p13 = scmp.ne.s32.totalorder %s2601_s18, %s2468_s15  ;;  %p2474_p1 = scmp.lt.s32.totalorder %s2468_s15, %s2468_s15 }
  0x3f   :  { %p2475_p2 = por %p2474_p1, %p2473_p0 }
  0x41   :  { %p2476_p3 = pnand %p2475_p2, %p2469_p13 }
  0x43   :  { %2479 = shalt.err (!%p2476_p3)
}
  0x44   :  { %71 = dma.hbm_to_vmem [thread:$0]  %s3055_s6, 256, %s2601_s18, [#allocation10], %s2511_s19, %s2511_s19, %s2512_s20  }
  0x45   :  { %2502 = dma.done.wait [#allocation4], 1024  }
  0x46   :  { %2503 = vsyncadd [#allocation4], 4294966272 }
  0x47   :  { %2504 = dma.done.wait [#allocation7], 1280  }
  0x48   :  { %2505 = vsyncadd [#allocation7], 4294966016 }
  0x49   :  { %2506 = dma.done.wait [#allocation10], 256  }
  0x4a   :  { %2507 = vsyncadd [#allocation10], 4294967040  ;;  %v2518_v0 = vmov 0.0   ;;  %vm2519_vm0 = vmmov 0   ;;  %v2274_v1 = vld [vmem:[#allocation6] sm:$0xff]   ;;  %v2276_v3 = vld [vmem:[#allocation6 + $0x8] sm:$0xff]  }
  0x4b   :  { %2068 = vmatprep.subr.bf16.mxu1 %v2518_v0  ;;  %2072 = vmatprep.mubr.msk.bf16.mxu1 %vm2519_vm0, %v2518_v0  ;;  %v2641_v2 = vld [vmem:[#allocation8] sm:$0xff]   ;;  %v2644_v4 = vld [vmem:[#allocation8 + $0x8] sm:$0xff]   ;;  %v2278_v5 = vld [vmem:[#allocation6 + $0x10] sm:$0xff]   ;;  %v2520_v7 = vmov 0   ;;  %v2521_v12 = vmov 1.0|1.0  }
  0x4c   :  { %2044 = vmatprep.subr.bf16.mxu0 %v2274_v1  ;;  %2069 = vmatpush3.bf16.msra.mxu1 %v2641_v2  ;;  %v2279_v6 = vld [vmem:[#allocation6 + $0x18] sm:$0xff]   ;;  %v89_v8 = vld [vmem:[#allocation3] sm:$0xff]  ;;  %v90_v9 = vld [vmem:[#allocation3 + $0x8] sm:$0xff]  ;;  %s2522_s18 = smov 96   ;;  %vm315_vm7 = vcmask 261120  }
  0x4d   :  { %2045 = vmatpush3.bf16.msra.mxu0 %v2274_v1  ;;  %2070 = vmatprep.subr.bf16.mxu1 %v2518_v0  ;;  %v2280_v10 = vld [vmem:[#allocation6 + $0x20] sm:$0xff]   ;;  %vm97_vm1 = vcmp.eq.s32.totalorder %v89_v8, 0  ;;  %vm98_vm2 = vcmp.eq.s32.totalorder %v90_v9, 0  ;;  %v2281_v13 = vld [vmem:[#allocation6 + $0x28] sm:$0xff]   ;;  %v2282_v14 = vld [vmem:[#allocation6 + $0x30] sm:$0xff]  }
  0x4e   :  { %2046 = vmatprep.subr.bf16.mxu0 %v2276_v3  ;;  %v1913_v11 = vld [vmem:[%s3053_s4] ss:$0 sm:$0xff]  ;;  %vm1904_vm3 = vmpackc.low %vm98_vm2, %vm97_vm1  ;;  %v2283_v15 = vld [vmem:[#allocation6 + $0x38] sm:$0xff]  }
  0x4f   :  { %366 = vrot.lane.b32.xlu0 %v1913_v11, %s2511_s19  ;;  %2060 = vmatprep.mubr.msk.bf16.mxu0 %vm1904_vm3, %v2521_v12  ;;  %v91_v16 = vld [vmem:[#allocation3 + $0x10] sm:$0xff]  ;;  %v92_v17 = vld [vmem:[#allocation3 + $0x18] sm:$0xff]  ;;  %v2676_v28 = vld [vmem:[%s3052_s3] ss:$0 sm:$0xff] }
  0x50   :  { %2071 = vmatpush3.bf16.msra.mxu1 %v2644_v4  ;;  %vm99_vm4 = vcmp.eq.s32.totalorder %v91_v16, 0  ;;  %vm100_vm5 = vcmp.eq.s32.totalorder %v92_v17, 0  ;;  %v2684_v40 = vld [vmem:[%s3054_s5] sm:$0xff]   ;;  %v2691_v41 = vld [vmem:[%s3054_s5 + $0x8] sm:$0xff]   ;;  %v2710_v50 = vld [vmem:[#allocation9] sm:$0xff]  }
  0x51   :  { %2047 = vmatpush3.bf16.msra.mxu0 %v2276_v3  ;;  %2076 = vmatprep.subr.bf16.mxu1 %v2518_v0  ;;  %vm1906_vm6 = vmpackc.low %vm100_vm5, %vm99_vm4  ;;  %v1914_v48 = vld [vmem:[%s3057_s8] ss:$0 sm:$0xff]  ;;  %v2715_v51 = vld [vmem:[#allocation9 + $0x8] sm:$0xff]  }
  0x52   :  { %2048 = vmatprep.subr.bf16.mxu0 %v2278_v5  ;;  %v2740_v9 = vld [vmem:[%s3056_s7] ss:$0 sm:$0xff] }
  0x53   :  { %2073 = vmatmul.mubr.bf16.vlgmr.msra.gmra.mrb[0].mxu1 %v2520_v7 }
  0x54   :  { %2077 = vmatpush3.bf16.msra.mxu1 %v2641_v2  ;;  %2080 = vmatprep.mubr.msk.bf16.mxu1 %vm2519_vm0, %v2518_v0 }
  0x55   :  { %2049 = vmatpush3.bf16.msra.mxu0 %v2278_v5  ;;  %2078 = vmatprep.subr.bf16.mxu1 %v2518_v0 }
  0x56   :  { %2050 = vmatprep.subr.bf16.mxu0 %v2279_v6 }
  0x58   :  { %2079 = vmatpush3.bf16.msra.mxu1 %v2644_v4 }
  0x59   :  { %2051 = vmatpush3.bf16.msra.mxu0 %v2279_v6  ;;  %2084 = vmatprep.subr.bf16.mxu1 %v2518_v0 }
  0x5a   :  { %2052 = vmatprep.subr.bf16.mxu0 %v2280_v10 }
  0x5d   :  { %2053 = vmatpush3.bf16.msra.mxu0 %v2280_v10 }
  0x5e   :  { %2054 = vmatprep.subr.bf16.mxu0 %v2281_v13 }
  0x61   :  { %2055 = vmatpush3.bf16.msra.mxu0 %v2281_v13 }
  0x62   :  { %2056 = vmatprep.subr.bf16.mxu0 %v2282_v14 }
  0x65   :  { %2057 = vmatpush3.bf16.msra.mxu0 %v2282_v14 }
  0x66   :  { %2058 = vmatprep.subr.bf16.mxu0 %v2283_v15 }
  0x69   :  { %2059 = vmatpush3.bf16.msra.mxu0 %v2283_v15 }
  0x6a   :  { %2108 = vmatprep.subr.bf16.mxu0 %v2518_v0 }
  0x6c   :  { %2061 = vmatmul.mubr.msk.bf16.vlgmr.msra.gmra.mrb[0].mxu0 %vm1906_vm6, %v2521_v12 }
  0x6d   :  { %2109 = vmatpush3.bf16.msra.mxu0 %v2684_v40 }
  0x6e   :  { %2110 = vmatprep.subr.bf16.mxu0 %v2518_v0 }
  0x71   :  { %2111 = vmatpush3.bf16.msra.mxu0 %v2691_v41 }
  0x72   :  { %2124 = vmatprep.subr.bf16.mxu0 %v2518_v0 }
  0xc1   :  { %v2663_v18 = vpop.permute.xlu0 %366 }
 0x126   :  { %v353_v19 = vpop.f32.mrb[0].mxu1 }
 0x127   :  { %v2074_v20 = vpop.f32.mrb[1].mxu1  ;;  %v369_v21 = vadd.f32 %v2663_v18, %v353_v19 }
 0x128   :  { %v356_v22 = vpop.f32.mrb[2].mxu1 }
 0x129   :  { %371 = vrot.lane.b32.xlu0 %v369_v21, %s2511_s19  ;;  %v2075_v23 = vpop.f32.mrb[3].mxu1 }
 0x13f   :  { %v2667_v24 = vpop.f32.mrb[0].mxu0 }
 0x140   :  { %v224_v25 = vpop.f32.mrb[1].mxu0 }
 0x141   :  { %v2669_v26 = vpop.f32.mrb[2].mxu0  ;;  %v261_v29 = vadd.f32 %v2676_v28, %v224_v25 }
 0x142   :  { %v2671_v27 = vpop.f32.mrb[3].mxu0 }
 0x143   :  { %v359_v30 = vadd.f32 %v353_v19, %v261_v29  ;;  %v262_v6 = vadd.f32 %v2676_v28, %v2671_v27 }
 0x145   :  { %v1917_v31 = vmul.f32 -1.442695, %v359_v30 }
 0x147   :  { %2288 = vpow2.f32 %v1917_v31 }
 0x151   :  { %v2289_v32 = vpop.eup %2288 }
 0x152   :  { %v363_v33 = vadd.f32 1.0, %v2289_v32 }
 0x154   :  { %2290 = vrcp.f32 %v363_v33  ;;  %v93_v33 = vld [vmem:[#allocation3 + $0x20] sm:$0xff] }
 0x155   :  { %vm101_vm8 = vcmp.eq.s32.totalorder %v93_v33, 0 }
 0x15e   :  { %v2291_v34 = vpop.eup %2290 }
 0x15f   :  { %v381_v42 = vsub.f32 1.0, %v2291_v34  ;;  %v387_v44 = vmul.f32 0.0, %v2291_v34 }
 0x19b   :  { %v372_v35 = vpop.permute.xlu0 %371 }
 0x19c   :  { %v374_v36 = vmul.f32 %v2291_v34, %v372_v35  ;;  %v94_v34 = vld [vmem:[#allocation3 + $0x28] sm:$0xff]  ;;  %v95_v35 = vld [vmem:[#allocation3 + $0x30] sm:$0xff] }
 0x19d   :  { %vm102_vm9 = vcmp.eq.s32.totalorder %v94_v34, 0  ;;  %vm103_vm10 = vcmp.eq.s32.totalorder %v95_v35, 0 }
 0x19e   :  { %376 = vrot.lane.b32.xlu1 %v374_v36, %s2511_s19  ;;  %v96_v36 = vld [vmem:[#allocation3 + $0x38] sm:$0xff]  ;;  %vm1908_vm11 = vmpackc.low %vm102_vm9, %vm101_vm8 }
 0x19f   :  { %vm104_vm12 = vcmp.eq.s32.totalorder %v96_v36, 0  ;;  %2064 = vmatprep.mubr.msk.bf16.mxu0 %vm1908_vm11, %v2521_v12 }
 0x1a0   :  { %vm1910_vm13 = vmpackc.low %vm104_vm12, %vm103_vm10 }
 0x1a1   :  { %2065 = vmatmul.mubr.msk.bf16.gmra.mrb[4].mxu0 %vm1910_vm13, %v2521_v12 }
 0x1a2   :  { %2112 = vmatprep.mubr.msk.bf16.mxu0 %vm2519_vm0, %v2518_v0 }
 0x210   :  { %v377_v37 = vpop.permute.xlu1 %376 }
 0x211   :  { %v379_v38 = vadd.f32 %v377_v37, %v261_v29 }
 0x213   :  { %2292 = vtanh.f32 %v379_v38 }
 0x21d   :  { %v2293_v39 = vpop.eup %2292 }
 0x21e   :  { %383 = vrot.lane.b32.xlu1 %v2293_v39, %s2522_s18 }
 0x222   :  { %582 = vrot.lane.b32.xlu1 %v1914_v48, %s2511_s19 }
 0x290   :  { %v384_v43 = vpop.permute.xlu1 %383 }
 0x291   :  { %v386_v45 = vmul.f32 %v384_v43, %v381_v42 }
 0x293   :  { %v2695_v46 = vadd.f32 %v387_v44, %v386_v45 }
 0x294   :  { %v2731_v61 = vpop.permute.xlu1 %582 }
 0x295   :  { %v389_v47 = vpack.c.bf16 %v2695_v46, %v2695_v46 }
 0x297   :  { %393 = vrot.lane.b32.xlu0 %v389_v47, %s2522_s18 }
 0x309   :  { %v394_v49 = vpop.permute.xlu0 %393 }
 0x30a   :  { %2081 = vmatmul.mubr.msk.bf16.vlgmr.msra.gmra.mrb[4].mxu1 %vm315_vm7, %v394_v49 }
 0x30b   :  { %2085 = vmatpush3.bf16.msra.mxu1 %v2684_v40  ;;  %2088 = vmatprep.mubr.msk.bf16.mxu1 %vm2519_vm0, %v2518_v0 }
 0x30c   :  { %2086 = vmatprep.subr.bf16.mxu1 %v2518_v0 }
 0x30f   :  { %2087 = vmatpush3.bf16.msra.mxu1 %v2691_v41 }
 0x310   :  { %2092 = vmatprep.subr.bf16.mxu1 %v2518_v0 }
 0x312   :  { %2089 = vmatmul.mubr.msk.bf16.vlgmr.msra.gmra.mrb[8].mxu1 %vm315_vm7, %v394_v49 }
 0x313   :  { %2093 = vmatpush3.bf16.msra.mxu1 %v2710_v50  ;;  %2096 = vmatprep.mubr.msk.bf16.mxu1 %vm2519_vm0, %v2518_v0 }
 0x314   :  { %2094 = vmatprep.subr.bf16.mxu1 %v2518_v0 }
 0x317   :  { %2095 = vmatpush3.bf16.msra.mxu1 %v2715_v51 }
 0x318   :  { %2100 = vmatprep.subr.bf16.mxu1 %v2518_v0 }
 0x31a   :  { %2097 = vmatmul.mubr.bf16.vlgmr.msra.gmra.mrb[12].mxu1 %v2520_v7 }
 0x31b   :  { %2101 = vmatpush3.bf16.msra.mxu1 %v2641_v2  ;;  %2104 = vmatprep.mubr.msk.bf16.mxu1 %vm2519_vm0, %v2518_v0 }
 0x31c   :  { %2102 = vmatprep.subr.bf16.mxu1 %v2518_v0 }
 0x31f   :  { %2103 = vmatpush3.bf16.msra.mxu1 %v2644_v4 }
 0x320   :  { %2116 = vmatprep.subr.bf16.mxu1 %v2518_v0 }
 0x3dd   :  { %v432_v52 = vpop.f32.mrb[4].mxu1 }
 0x3de   :  { %v2082_v53 = vpop.f32.mrb[5].mxu1  ;;  %v445_v54 = vadd.f32 %v432_v52, %v2663_v18  ;;  %v438_v7 = vadd.f32 %v432_v52, %v262_v6 }
 0x3df   :  { %v435_v55 = vpop.f32.mrb[6].mxu1 }
 0x3e0   :  { %447 = vrot.lane.b32.xlu0 %v445_v54, %s2511_s19  ;;  %v2083_v56 = vpop.f32.mrb[7].mxu1  ;;  %v1919_v8 = vmul.f32 -1.442695, %v438_v7 }
 0x3e2   :  { %2294 = vpow2.f32 %v1919_v8 }
 0x3e5   :  { %v517_v57 = vpop.f32.mrb[8].mxu1 }
 0x3e6   :  { %v2090_v58 = vpop.f32.mrb[9].mxu1  ;;  %v518_v10 = vadd.f32 %v2740_v9, %v517_v57 }
 0x3e7   :  { %v520_v59 = vpop.f32.mrb[10].mxu1 }
 0x3e8   :  { %v2091_v60 = vpop.f32.mrb[11].mxu1 }
 0x3ec   :  { %v2295_v13 = vpop.eup %2294 }
 0x3ed   :  { %v569_v62 = vpop.f32.mrb[12].mxu1  ;;  %v442_v15 = vadd.f32 1.0, %v2295_v13 }
 0x3ee   :  { %v2098_v63 = vpop.f32.mrb[13].mxu1  ;;  %v585_v1 = vadd.f32 %v2731_v61, %v569_v62  ;;  %v575_v11 = vadd.f32 %v569_v62, %v518_v10 }
 0x3ef   :  { %v572_v3 = vpop.f32.mrb[14].mxu1 }
 0x3f0   :  { %v2099_v5 = vpop.f32.mrb[15].mxu1  ;;  %587 = vrot.lane.b32.xlu1 %v585_v1, %s2511_s19  ;;  %v1926_v14 = vmul.f32 -1.442695, %v575_v11 }
 0x3f2   :  { %2296 = vpow2.f32 %v1926_v14 }
 0x3f3   :  { %2298 = vrcp.f32 %v442_v15  ;;  %v263_v15 = vadd.f32 %v2667_v24, %v2676_v28 }
 0x3fc   :  { %v2297_v16 = vpop.eup %2296 }
 0x3fd   :  { %v2299_v17 = vpop.eup %2298  ;;  %v579_v21 = vadd.f32 1.0, %v2297_v16 }
 0x3fe   :  { %v457_v38 = vsub.f32 1.0, %v2299_v17  ;;  %v463_v42 = vmul.f32 %v2299_v17, %v2695_v46  ;;  %v2762_v46 = vpop.f32.mrb[4].mxu0 }
 0x3ff   :  { %2300 = vrcp.f32 %v579_v21  ;;  %v2764_v54 = vpop.f32.mrb[5].mxu0 }
 0x400   :  { %v2766_v55 = vpop.f32.mrb[6].mxu0 }
 0x401   :  { %v2768_v56 = vpop.f32.mrb[7].mxu0 }
 0x409   :  { %v2301_v22 = vpop.eup %2300 }
 0x40a   :  { %v597_v47 = vsub.f32 1.0, %v2301_v22  ;;  %v603_v48 = vmul.f32 0.0, %v2301_v22 }
 0x452   :  { %v448_v19 = vpop.permute.xlu0 %447 }
 0x453   :  { %v450_v20 = vmul.f32 %v2299_v17, %v448_v19 }
 0x455   :  { %452 = vrot.lane.b32.xlu0 %v450_v20, %s2511_s19 }
 0x462   :  { %v588_v23 = vpop.permute.xlu1 %587 }
 0x463   :  { %v590_v25 = vmul.f32 %v2301_v22, %v588_v23 }
 0x465   :  { %592 = vrot.lane.b32.xlu1 %v590_v25, %s2511_s19 }
 0x4c7   :  { %v453_v27 = vpop.permute.xlu0 %452 }
 0x4c8   :  { %v455_v29 = vadd.f32 %v453_v27, %v262_v6 }
 0x4ca   :  { %2302 = vtanh.f32 %v455_v29 }
 0x4d4   :  { %v2303_v30 = vpop.eup %2302 }
 0x4d5   :  { %459 = vrot.lane.b32.xlu0 %v2303_v30, %s2522_s18 }
 0x4d7   :  { %v593_v31 = vpop.permute.xlu1 %592 }
 0x4d8   :  { %v595_v32 = vadd.f32 %v593_v31, %v518_v10 }
 0x4da   :  { %2304 = vtanh.f32 %v595_v32 }
 0x4e4   :  { %v2305_v37 = vpop.eup %2304 }
 0x4e5   :  { %599 = vrot.lane.b32.xlu1 %v2305_v37, %s2522_s18 }
 0x547   :  { %v460_v39 = vpop.permute.xlu0 %459 }
 0x548   :  { %v462_v43 = vmul.f32 %v460_v39, %v457_v38 }
 0x54a   :  { %v2752_v44 = vadd.f32 %v463_v42, %v462_v43 }
 0x54c   :  { %v605_v45 = vpack.c.bf16 %v2752_v44, %v2752_v44 }
 0x54e   :  { %610 = vrot.lane.b32.xlu0 %v605_v45, %s2522_s18 }
 0x557   :  { %v600_v12 = vpop.permute.xlu1 %599 }
 0x558   :  { %v602_v49 = vmul.f32 %v600_v12, %v597_v47 }
 0x55a   :  { %v2757_v52 = vadd.f32 %v603_v48, %v602_v49 }
 0x55c   :  { %v606_v53 = vpack.c.bf16 %v2757_v52, %v2757_v52 }
 0x55e   :  { %723 = vrot.lane.b32.xlu1 %v606_v53, %s2522_s18 }
 0x5c0   :  { %v611_v57 = vpop.permute.xlu0 %610 }
 0x5c1   :  { %2105 = vmatmul.mubr.msk.bf16.vlgmr.msra.gmra.mrb[16].mxu1 %vm315_vm7, %v611_v57  ;;  %2113 = vmatmul.mubr.msk.bf16.vlgmr.msra.gmra.mrb[8].mxu0 %vm315_vm7, %v611_v57 }
 0x5c2   :  { %2117 = vmatpush3.bf16.msra.mxu1 %v2710_v50  ;;  %2120 = vmatprep.mubr.msk.bf16.mxu1 %vm2519_vm0, %v2518_v0 }
 0x5c3   :  { %2118 = vmatprep.subr.bf16.mxu1 %v2518_v0  ;;  %2125 = vmatpush3.bf16.msra.mxu0 %v2641_v2 }
 0x5c4   :  { %2126 = vmatprep.subr.bf16.mxu0 %v2518_v0  ;;  %2128 = vmatprep.mubr.msk.bf16.mxu0 %vm2519_vm0, %v2518_v0 }
 0x5c6   :  { %2119 = vmatpush3.bf16.msra.mxu1 %v2715_v51 }
 0x5c7   :  { %2132 = vmatprep.subr.bf16.mxu1 %v2518_v0  ;;  %2127 = vmatpush3.bf16.msra.mxu0 %v2644_v4 }
 0x5c8   :  { %2140 = vmatprep.subr.bf16.mxu0 %v2518_v0 }
 0x5d0   :  { %v724_v58 = vpop.permute.xlu1 %723 }
 0x5d1   :  { %2121 = vmatmul.mubr.msk.bf16.vlgmr.msra.gmra.mrb[20].mxu1 %vm315_vm7, %v724_v58 }
 0x5d2   :  { %2133 = vmatpush3.bf16.msra.mxu1 %v2684_v40  ;;  %2136 = vmatprep.mubr.msk.bf16.mxu1 %vm2519_vm0, %v2518_v0 }
 0x5d3   :  { %2134 = vmatprep.subr.bf16.mxu1 %v2518_v0 }
 0x5d6   :  { %2135 = vmatpush3.bf16.msra.mxu1 %v2691_v41 }
 0x5d7   :  { %2148 = vmatprep.subr.bf16.mxu1 %v2518_v0 }
 0x694   :  { %v649_v59 = vpop.f32.mrb[16].mxu1  ;;  %v716_v60 = vpop.f32.mrb[8].mxu0 }
 0x695   :  { %v2106_v62 = vpop.f32.mrb[17].mxu1  ;;  %v2114_v63 = vpop.f32.mrb[9].mxu0  ;;  %v662_v1 = vadd.f32 %v649_v59, %v2663_v18  ;;  %v655_v16 = vadd.f32 %v649_v59, %v263_v15  ;;  %v717_v19 = vadd.f32 %v2740_v9, %v716_v60 }
 0x696   :  { %v652_v3 = vpop.f32.mrb[18].mxu1  ;;  %v719_v5 = vpop.f32.mrb[10].mxu0 }
 0x697   :  { %664 = vrot.lane.b32.xlu0 %v662_v1, %s2511_s19  ;;  %v2107_v6 = vpop.f32.mrb[19].mxu1  ;;  %v2115_v7 = vpop.f32.mrb[11].mxu0  ;;  %v1928_v17 = vmul.f32 -1.442695, %v655_v16 }
 0x699   :  { %2306 = vpow2.f32 %v1928_v17  ;;  %v264_v17 = vadd.f32 %v2669_v26, %v2676_v28 }
 0x6a3   :  { %v2307_v21 = vpop.eup %2306 }
 0x6a4   :  { %v762_v8 = vpop.f32.mrb[20].mxu1  ;;  %v659_v23 = vadd.f32 1.0, %v2307_v21 }
 0x6a5   :  { %v2122_v10 = vpop.f32.mrb[21].mxu1  ;;  %v775_v11 = vadd.f32 %v762_v8, %v2731_v61  ;;  %v768_v20 = vadd.f32 %v762_v8, %v717_v19 }
 0x6a6   :  { %v765_v13 = vpop.f32.mrb[22].mxu1 }
 0x6a7   :  { %777 = vrot.lane.b32.xlu1 %v775_v11, %s2511_s19  ;;  %v2123_v14 = vpop.f32.mrb[23].mxu1  ;;  %v1931_v22 = vmul.f32 -1.442695, %v768_v20 }
 0x6a9   :  { %2308 = vpow2.f32 %v1931_v22 }
 0x6aa   :  { %2310 = vrcp.f32 %v659_v23 }
 0x6b3   :  { %v2309_v25 = vpop.eup %2308 }
 0x6b4   :  { %v2311_v27 = vpop.eup %2310  ;;  %v772_v31 = vadd.f32 1.0, %v2309_v25 }
 0x6b5   :  { %v674_v42 = vsub.f32 1.0, %v2311_v27  ;;  %v680_v45 = vmul.f32 %v2311_v27, %v2752_v44 }
 0x6b6   :  { %2312 = vrcp.f32 %v772_v31 }
 0x6c0   :  { %v2313_v24 = vpop.eup %2312 }
 0x6c1   :  { %v787_v49 = vsub.f32 1.0, %v2313_v24  ;;  %v793_v57 = vmul.f32 %v2313_v24, %v2757_v52 }
 0x709   :  { %v665_v29 = vpop.permute.xlu0 %664 }
 0x70a   :  { %v667_v30 = vmul.f32 %v2311_v27, %v665_v29 }
 0x70c   :  { %669 = vrot.lane.b32.xlu0 %v667_v30, %s2511_s19 }
 0x719   :  { %v778_v32 = vpop.permute.xlu1 %777 }
 0x71a   :  { %v780_v33 = vmul.f32 %v2313_v24, %v778_v32 }
 0x71c   :  { %782 = vrot.lane.b32.xlu1 %v780_v33, %s2511_s19 }
 0x77e   :  { %v670_v34 = vpop.permute.xlu0 %669 }
 0x77f   :  { %v672_v35 = vadd.f32 %v670_v34, %v263_v15 }
 0x781   :  { %2314 = vtanh.f32 %v672_v35 }
 0x78b   :  { %v2315_v36 = vpop.eup %2314 }
 0x78c   :  { %676 = vrot.lane.b32.xlu0 %v2315_v36, %s2522_s18 }
 0x78e   :  { %v783_v37 = vpop.permute.xlu1 %782 }
 0x78f   :  { %v785_v38 = vadd.f32 %v783_v37, %v717_v19 }
 0x791   :  { %2316 = vtanh.f32 %v785_v38 }
 0x79b   :  { %v2317_v39 = vpop.eup %2316 }
 0x79c   :  { %789 = vrot.lane.b32.xlu1 %v2317_v39, %s2522_s18 }
 0x7fe   :  { %v677_v43 = vpop.permute.xlu0 %676 }
 0x7ff   :  { %v679_v47 = vmul.f32 %v677_v43, %v674_v42 }
 0x801   :  { %v2803_v12 = vadd.f32 %v680_v45, %v679_v47 }
 0x803   :  { %v795_v48 = vpack.c.bf16 %v2803_v12, %v2803_v12 }
 0x805   :  { %800 = vrot.lane.b32.xlu0 %v795_v48, %s2522_s18 }
 0x80e   :  { %v790_v53 = vpop.permute.xlu1 %789 }
 0x80f   :  { %v792_v58 = vmul.f32 %v790_v53, %v787_v49 }
 0x811   :  { %v2809_v59 = vadd.f32 %v793_v57, %v792_v58 }
 0x813   :  { %v796_v60 = vpack.c.bf16 %v2809_v59, %v2809_v59 }
 0x815   :  { %913 = vrot.lane.b32.xlu1 %v796_v60, %s2522_s18 }
 0x877   :  { %v801_v44 = vpop.permute.xlu0 %800 }
 0x878   :  { %2129 = vmatmul.mubr.msk.bf16.vlgmr.msra.gmra.mrb[12].mxu0 %vm315_vm7, %v801_v44  ;;  %2137 = vmatmul.mubr.msk.bf16.vlgmr.msra.gmra.mrb[24].mxu1 %vm315_vm7, %v801_v44 }
 0x879   :  { %2141 = vmatpush3.bf16.msra.mxu0 %v2710_v50  ;;  %2144 = vmatprep.mubr.msk.bf16.mxu0 %vm2519_vm0, %v2518_v0 }
 0x87a   :  { %2142 = vmatprep.subr.bf16.mxu0 %v2518_v0  ;;  %2149 = vmatpush3.bf16.msra.mxu1 %v2641_v2 }
 0x87b   :  { %2150 = vmatprep.subr.bf16.mxu1 %v2518_v0  ;;  %2152 = vmatprep.mubr.msk.bf16.mxu1 %vm2519_vm0, %v2518_v0 }
 0x87d   :  { %2143 = vmatpush3.bf16.msra.mxu0 %v2715_v51 }
 0x87e   :  { %2156 = vmatprep.subr.bf16.mxu0 %v2518_v0  ;;  %2151 = vmatpush3.bf16.msra.mxu1 %v2644_v4 }
 0x87f   :  { %2164 = vmatprep.subr.bf16.mxu1 %v2518_v0 }
 0x887   :  { %v914_v52 = vpop.permute.xlu1 %913 }
 0x888   :  { %2145 = vmatmul.mubr.msk.bf16.vlgmr.msra.gmra.mrb[16].mxu0 %vm315_vm7, %v914_v52 }
 0x889   :  { %2157 = vmatpush3.bf16.msra.mxu0 %v2684_v40  ;;  %2160 = vmatprep.mubr.msk.bf16.mxu0 %vm2519_vm0, %v2518_v0 }
 0x88a   :  { %2158 = vmatprep.subr.bf16.mxu0 %v2518_v0 }
 0x88d   :  { %2159 = vmatpush3.bf16.msra.mxu0 %v2691_v41 }
 0x88e   :  { %2172 = vmatprep.subr.bf16.mxu0 %v2518_v0 }
 0x94b   :  { %v839_v62 = vpop.f32.mrb[12].mxu0  ;;  %v906_v63 = vpop.f32.mrb[24].mxu1 }
 0x94c   :  { %v2130_v1 = vpop.f32.mrb[13].mxu0  ;;  %v2138_v3 = vpop.f32.mrb[25].mxu1  ;;  %v852_v5 = vadd.f32 %v839_v62, %v2663_v18  ;;  %v845_v19 = vadd.f32 %v839_v62, %v264_v17  ;;  %v907_v21 = vadd.f32 %v2740_v9, %v906_v63 }
 0x94d   :  { %v842_v6 = vpop.f32.mrb[14].mxu0  ;;  %v909_v7 = vpop.f32.mrb[26].mxu1 }
 0x94e   :  { %v2139_v8 = vpop.f32.mrb[27].mxu1  ;;  %854 = vrot.lane.b32.xlu0 %v852_v5, %s2511_s19  ;;  %v2131_v10 = vpop.f32.mrb[15].mxu0  ;;  %v1933_v20 = vmul.f32 -1.442695, %v845_v19  ;;  %v265_v19 = vadd.f32 %v2676_v28, %v2764_v54 }
 0x950   :  { %2318 = vpow2.f32 %v1933_v20 }
 0x95a   :  { %v2319_v23 = vpop.eup %2318 }
 0x95b   :  { %v952_v11 = vpop.f32.mrb[16].mxu0  ;;  %v849_v27 = vadd.f32 1.0, %v2319_v23 }
 0x95c   :  { %v2146_v13 = vpop.f32.mrb[17].mxu0  ;;  %v965_v14 = vadd.f32 %v952_v11, %v2731_v61  ;;  %v958_v22 = vadd.f32 %v952_v11, %v907_v21 }
 0x95d   :  { %v955_v15 = vpop.f32.mrb[18].mxu0 }
 0x95e   :  { %967 = vrot.lane.b32.xlu1 %v965_v14, %s2511_s19  ;;  %v2147_v16 = vpop.f32.mrb[19].mxu0  ;;  %v1936_v25 = vmul.f32 -1.442695, %v958_v22 }
 0x960   :  { %2320 = vpow2.f32 %v1936_v25 }
 0x961   :  { %2322 = vrcp.f32 %v849_v27 }
 0x96a   :  { %v2321_v29 = vpop.eup %2320 }
 0x96b   :  { %v2323_v30 = vpop.eup %2322  ;;  %v962_v32 = vadd.f32 1.0, %v2321_v29 }
 0x96c   :  { %v864_v43 = vsub.f32 1.0, %v2323_v30  ;;  %v870_v47 = vmul.f32 %v2323_v30, %v2803_v12 }
 0x96d   :  { %2324 = vrcp.f32 %v962_v32 }
 0x977   :  { %v2325_v26 = vpop.eup %2324 }
 0x978   :  { %v977_v57 = vsub.f32 1.0, %v2325_v26  ;;  %v983_v60 = vmul.f32 %v2325_v26, %v2809_v59 }
 0x9c0   :  { %v855_v31 = vpop.permute.xlu0 %854 }
 0x9c1   :  { %v857_v24 = vmul.f32 %v2323_v30, %v855_v31 }
 0x9c3   :  { %859 = vrot.lane.b32.xlu0 %v857_v24, %s2511_s19 }
 0x9d0   :  { %v968_v33 = vpop.permute.xlu1 %967 }
 0x9d1   :  { %v970_v34 = vmul.f32 %v2325_v26, %v968_v33 }
 0x9d3   :  { %972 = vrot.lane.b32.xlu1 %v970_v34, %s2511_s19 }
 0xa35   :  { %v860_v35 = vpop.permute.xlu0 %859 }
 0xa36   :  { %v862_v36 = vadd.f32 %v860_v35, %v264_v17 }
 0xa38   :  { %2326 = vtanh.f32 %v862_v36 }
 0xa42   :  { %v2327_v37 = vpop.eup %2326 }
 0xa43   :  { %866 = vrot.lane.b32.xlu0 %v2327_v37, %s2522_s18 }
 0xa45   :  { %v973_v38 = vpop.permute.xlu1 %972 }
 0xa46   :  { %v975_v39 = vadd.f32 %v973_v38, %v907_v21 }
 0xa48   :  { %2328 = vtanh.f32 %v975_v39 }
 0xa52   :  { %v2329_v42 = vpop.eup %2328 }
 0xa53   :  { %979 = vrot.lane.b32.xlu1 %v2329_v42, %s2522_s18 }
 0xab5   :  { %v867_v45 = vpop.permute.xlu0 %866 }
 0xab6   :  { %v869_v48 = vmul.f32 %v867_v45, %v864_v43 }
 0xab8   :  { %v2847_v49 = vadd.f32 %v870_v47, %v869_v48 }
 0xaba   :  { %v985_v53 = vpack.c.bf16 %v2847_v49, %v2847_v49 }
 0xabc   :  { %990 = vrot.lane.b32.xlu0 %v985_v53, %s2522_s18 }
 0xac5   :  { %v980_v58 = vpop.permute.xlu1 %979 }
 0xac6   :  { %v982_v44 = vmul.f32 %v980_v58, %v977_v57 }
 0xac8   :  { %v2853_v52 = vadd.f32 %v983_v60, %v982_v44 }
 0xaca   :  { %v986_v62 = vpack.c.bf16 %v2853_v52, %v2853_v52 }
 0xacc   :  { %1103 = vrot.lane.b32.xlu1 %v986_v62, %s2522_s18 }
 0xb2e   :  { %v991_v12 = vpop.permute.xlu0 %990 }
 0xb2f   :  { %2153 = vmatmul.mubr.msk.bf16.vlgmr.msra.gmra.mrb[28].mxu1 %vm315_vm7, %v991_v12  ;;  %2161 = vmatmul.mubr.msk.bf16.vlgmr.msra.gmra.mrb[20].mxu0 %vm315_vm7, %v991_v12 }
 0xb30   :  { %2165 = vmatpush3.bf16.msra.mxu1 %v2710_v50  ;;  %2168 = vmatprep.mubr.msk.bf16.mxu1 %vm2519_vm0, %v2518_v0 }
 0xb31   :  { %2166 = vmatprep.subr.bf16.mxu1 %v2518_v0  ;;  %2173 = vmatpush3.bf16.msra.mxu0 %v2641_v2 }
 0xb32   :  { %2174 = vmatprep.subr.bf16.mxu0 %v2518_v0  ;;  %2176 = vmatprep.mubr.msk.bf16.mxu0 %vm2519_vm0, %v2518_v0 }
 0xb34   :  { %2167 = vmatpush3.bf16.msra.mxu1 %v2715_v51 }
 0xb35   :  { %2180 = vmatprep.subr.bf16.mxu1 %v2518_v0  ;;  %2175 = vmatpush3.bf16.msra.mxu0 %v2644_v4 }
 0xb36   :  { %2188 = vmatprep.subr.bf16.mxu0 %v2518_v0 }
 0xb3e   :  { %v1104_v59 = vpop.permute.xlu1 %1103 }
 0xb3f   :  { %2169 = vmatmul.mubr.msk.bf16.vlgmr.msra.gmra.mrb[32].mxu1 %vm315_vm7, %v1104_v59 }
 0xb40   :  { %2181 = vmatpush3.bf16.msra.mxu1 %v2684_v40  ;;  %2184 = vmatprep.mubr.msk.bf16.mxu1 %vm2519_vm0, %v2518_v0 }
 0xb41   :  { %2182 = vmatprep.subr.bf16.mxu1 %v2518_v0 }
 0xb44   :  { %2183 = vmatpush3.bf16.msra.mxu1 %v2691_v41 }
 0xb45   :  { %2196 = vmatprep.subr.bf16.mxu1 %v2518_v0 }
 0xc02   :  { %v1029_v63 = vpop.f32.mrb[28].mxu1  ;;  %v1096_v1 = vpop.f32.mrb[20].mxu0 }
 0xc03   :  { %v2154_v3 = vpop.f32.mrb[29].mxu1  ;;  %v2162_v5 = vpop.f32.mrb[21].mxu0  ;;  %v1042_v6 = vadd.f32 %v1029_v63, %v2663_v18  ;;  %v1035_v20 = vadd.f32 %v1029_v63, %v265_v19  ;;  %v1097_v22 = vadd.f32 %v2740_v9, %v1096_v1 }
 0xc04   :  { %v1032_v7 = vpop.f32.mrb[30].mxu1  ;;  %v1099_v8 = vpop.f32.mrb[22].mxu0 }
 0xc05   :  { %1044 = vrot.lane.b32.xlu0 %v1042_v6, %s2511_s19  ;;  %v2155_v10 = vpop.f32.mrb[31].mxu1  ;;  %v2163_v11 = vpop.f32.mrb[23].mxu0  ;;  %v1938_v21 = vmul.f32 -1.442695, %v1035_v20 }
 0xc07   :  { %2330 = vpow2.f32 %v1938_v21 }
 0xc11   :  { %v2331_v25 = vpop.eup %2330 }
 0xc12   :  { %v1142_v13 = vpop.f32.mrb[32].mxu1  ;;  %v1039_v29 = vadd.f32 1.0, %v2331_v25 }
 0xc13   :  { %v2170_v14 = vpop.f32.mrb[33].mxu1  ;;  %v1155_v15 = vadd.f32 %v1142_v13, %v2731_v61  ;;  %v1148_v23 = vadd.f32 %v1142_v13, %v1097_v22 }
 0xc14   :  { %v1145_v16 = vpop.f32.mrb[34].mxu1 }
 0xc15   :  { %1157 = vrot.lane.b32.xlu1 %v1155_v15, %s2511_s19  ;;  %v2171_v17 = vpop.f32.mrb[35].mxu1  ;;  %v1941_v27 = vmul.f32 -1.442695, %v1148_v23  ;;  %v266_v16 = vadd.f32 %v2676_v28, %v2768_v56 }
 0xc17   :  { %2332 = vpow2.f32 %v1941_v27 }
 0xc18   :  { %2334 = vrcp.f32 %v1039_v29 }
 0xc21   :  { %v2333_v30 = vpop.eup %2332 }
 0xc22   :  { %v2335_v31 = vpop.eup %2334  ;;  %v1152_v26 = vadd.f32 1.0, %v2333_v30 }
 0xc23   :  { %v1054_v43 = vsub.f32 1.0, %v2335_v31  ;;  %v1060_v47 = vmul.f32 %v2335_v31, %v2847_v49 }
 0xc24   :  { %2336 = vrcp.f32 %v1152_v26 }
 0xc2e   :  { %v2337_v54 = vpop.eup %2336 }
 0xc2f   :  { %v1167_v58 = vsub.f32 1.0, %v2337_v54  ;;  %v1173_v44 = vmul.f32 %v2337_v54, %v2853_v52 }
 0xc77   :  { %v1045_v24 = vpop.permute.xlu0 %1044 }
 0xc78   :  { %v1047_v32 = vmul.f32 %v2335_v31, %v1045_v24 }
 0xc7a   :  { %1049 = vrot.lane.b32.xlu0 %v1047_v32, %s2511_s19 }
 0xc87   :  { %v1158_v33 = vpop.permute.xlu1 %1157 }
 0xc88   :  { %v1160_v34 = vmul.f32 %v2337_v54, %v1158_v33 }
 0xc8a   :  { %1162 = vrot.lane.b32.xlu1 %v1160_v34, %s2511_s19 }
 0xcec   :  { %v1050_v35 = vpop.permute.xlu0 %1049 }
 0xced   :  { %v1052_v36 = vadd.f32 %v1050_v35, %v265_v19 }
 0xcef   :  { %2338 = vtanh.f32 %v1052_v36 }
 0xcf9   :  { %v2339_v37 = vpop.eup %2338 }
 0xcfa   :  { %1056 = vrot.lane.b32.xlu0 %v2339_v37, %s2522_s18 }
 0xcfc   :  { %v1163_v38 = vpop.permute.xlu1 %1162 }
 0xcfd   :  { %v1165_v39 = vadd.f32 %v1163_v38, %v1097_v22 }
 0xcff   :  { %2340 = vtanh.f32 %v1165_v39 }
 0xd09   :  { %v2341_v42 = vpop.eup %2340 }
 0xd0a   :  { %1169 = vrot.lane.b32.xlu1 %v2341_v42, %s2522_s18 }
 0xd6c   :  { %v1057_v45 = vpop.permute.xlu0 %1056 }
 0xd6d   :  { %v1059_v48 = vmul.f32 %v1057_v45, %v1054_v43 }
 0xd6f   :  { %v2891_v53 = vadd.f32 %v1060_v47, %v1059_v48 }
 0xd71   :  { %v1175_v57 = vpack.c.bf16 %v2891_v53, %v2891_v53 }
 0xd73   :  { %1180 = vrot.lane.b32.xlu0 %v1175_v57, %s2522_s18 }
 0xd7c   :  { %v1170_v60 = vpop.permute.xlu1 %1169 }
 0xd7d   :  { %v1172_v62 = vmul.f32 %v1170_v60, %v1167_v58 }
 0xd7f   :  { %v2897_v12 = vadd.f32 %v1173_v44, %v1172_v62 }
 0xd81   :  { %v1176_v59 = vpack.c.bf16 %v2897_v12, %v2897_v12 }
 0xd83   :  { %1293 = vrot.lane.b32.xlu1 %v1176_v59, %s2522_s18  ;;  %v2385_v59 = vld [vmem:[#allocation8 + $0x8] sm:$0xff]  }
 0xde5   :  { %v1181_v49 = vpop.permute.xlu0 %1180 }
 0xde6   :  { %2177 = vmatmul.mubr.msk.bf16.vlgmr.msra.gmra.mrb[24].mxu0 %vm315_vm7, %v1181_v49  ;;  %2185 = vmatmul.mubr.msk.bf16.vlgmr.msra.gmra.mrb[36].mxu1 %vm315_vm7, %v1181_v49 }
 0xde7   :  { %2189 = vmatpush3.bf16.msra.mxu0 %v2710_v50  ;;  %2192 = vmatprep.mubr.msk.bf16.mxu0 %vm2519_vm0, %v2518_v0 }
 0xde8   :  { %2190 = vmatprep.subr.bf16.mxu0 %v2518_v0  ;;  %2197 = vmatpush3.bf16.msra.mxu1 %v2641_v2 }
 0xde9   :  { %2198 = vmatprep.subr.bf16.mxu1 %v2518_v0  ;;  %2200 = vmatprep.mubr.msk.bf16.mxu1 %vm2519_vm0, %v2518_v0 }
 0xdeb   :  { %2191 = vmatpush3.bf16.msra.mxu0 %v2715_v51 }
 0xdec   :  { %2204 = vmatprep.subr.bf16.mxu0 %v2518_v0  ;;  %2199 = vmatpush3.bf16.msra.mxu1 %v2644_v4 }
 0xded   :  { %2212 = vmatprep.subr.bf16.mxu1 %v2518_v0 }
 0xdf5   :  { %v1294_v52 = vpop.permute.xlu1 %1293 }
 0xdf6   :  { %2193 = vmatmul.mubr.msk.bf16.vlgmr.msra.gmra.mrb[28].mxu0 %vm315_vm7, %v1294_v52 }
 0xdf7   :  { %2205 = vmatpush3.bf16.msra.mxu0 %v2684_v40  ;;  %2208 = vmatprep.mubr.msk.bf16.mxu0 %vm2519_vm0, %v2518_v0 }
 0xdf8   :  { %2206 = vmatprep.subr.bf16.mxu0 %v2518_v0 }
 0xdfb   :  { %2207 = vmatpush3.bf16.msra.mxu0 %v2691_v41 }
 0xdfc   :  { %2220 = vmatprep.subr.bf16.mxu0 %v2518_v0 }
 0xeb9   :  { %v1219_v2 = vpop.f32.mrb[24].mxu0  ;;  %v1286_v63 = vpop.f32.mrb[36].mxu1 }
 0xeba   :  { %v2178_v1 = vpop.f32.mrb[25].mxu0  ;;  %v2186_v4 = vpop.f32.mrb[37].mxu1  ;;  %v1232_v3 = vadd.f32 %v1219_v2, %v2663_v18  ;;  %v1225_v17 = vadd.f32 %v1219_v2, %v266_v16  ;;  %v1287_v20 = vadd.f32 %v2740_v9, %v1286_v63 }
 0xebb   :  { %v1222_v5 = vpop.f32.mrb[26].mxu0  ;;  %v1289_v6 = vpop.f32.mrb[38].mxu1 }
 0xebc   :  { %v2187_v7 = vpop.f32.mrb[39].mxu1  ;;  %1234 = vrot.lane.b32.xlu0 %v1232_v3, %s2511_s19  ;;  %v2179_v8 = vpop.f32.mrb[27].mxu0  ;;  %v1943_v19 = vmul.f32 -1.442695, %v1225_v17 }
 0xebe   :  { %2342 = vpow2.f32 %v1943_v19 }
 0xec8   :  { %v2343_v22 = vpop.eup %2342 }
 0xec9   :  { %v1332_v10 = vpop.f32.mrb[28].mxu0  ;;  %v1229_v25 = vadd.f32 1.0, %v2343_v22 }
 0xeca   :  { %v2194_v11 = vpop.f32.mrb[29].mxu0  ;;  %v1345_v13 = vadd.f32 %v1332_v10, %v2731_v61  ;;  %v1338_v21 = vadd.f32 %v1332_v10, %v1287_v20 }
 0xecb   :  { %v1335_v14 = vpop.f32.mrb[30].mxu0 }
 0xecc   :  { %1347 = vrot.lane.b32.xlu1 %v1345_v13, %s2511_s19  ;;  %v2195_v15 = vpop.f32.mrb[31].mxu0  ;;  %v1946_v23 = vmul.f32 -1.442695, %v1338_v21  ;;  %v267_v13 = vadd.f32 %v2762_v46, %v2676_v28 }
 0xece   :  { %2344 = vpow2.f32 %v1946_v23 }
 0xecf   :  { %2346 = vrcp.f32 %v1229_v25 }
 0xed8   :  { %v2345_v27 = vpop.eup %2344 }
 0xed9   :  { %v2347_v29 = vpop.eup %2346  ;;  %v1342_v24 = vadd.f32 1.0, %v2345_v27 }
 0xeda   :  { %v1244_v38 = vsub.f32 1.0, %v2347_v29  ;;  %v1250_v42 = vmul.f32 %v2347_v29, %v2891_v53 }
 0xedb   :  { %2348 = vrcp.f32 %v1342_v24 }
 0xee5   :  { %v2349_v56 = vpop.eup %2348 }
 0xee6   :  { %v1357_v48 = vsub.f32 1.0, %v2349_v56  ;;  %v1363_v58 = vmul.f32 %v2349_v56, %v2897_v12  ;;  %v2384_v12 = vld [vmem:[#allocation8] sm:$0xff]  }
 0xf2e   :  { %v1235_v30 = vpop.permute.xlu0 %1234 }
 0xf2f   :  { %v1237_v31 = vmul.f32 %v2347_v29, %v1235_v30 }
 0xf31   :  { %1239 = vrot.lane.b32.xlu0 %v1237_v31, %s2511_s19 }
 0xf3e   :  { %v1348_v32 = vpop.permute.xlu1 %1347 }
 0xf3f   :  { %v1350_v26 = vmul.f32 %v2349_v56, %v1348_v32 }
 0xf41   :  { %1352 = vrot.lane.b32.xlu1 %v1350_v26, %s2511_s19 }
 0xfa3   :  { %v1240_v54 = vpop.permute.xlu0 %1239 }
 0xfa4   :  { %v1242_v33 = vadd.f32 %v1240_v54, %v266_v16 }
 0xfa6   :  { %2350 = vtanh.f32 %v1242_v33 }
 0xfb0   :  { %v2351_v34 = vpop.eup %2350 }
 0xfb1   :  { %1246 = vrot.lane.b32.xlu0 %v2351_v34, %s2522_s18 }
 0xfb3   :  { %v1353_v35 = vpop.permute.xlu1 %1352 }
 0xfb4   :  { %v1355_v36 = vadd.f32 %v1353_v35, %v1287_v20 }
 0xfb6   :  { %2352 = vtanh.f32 %v1355_v36 }
 0xfc0   :  { %v2353_v37 = vpop.eup %2352 }
 0xfc1   :  { %1359 = vrot.lane.b32.xlu1 %v2353_v37, %s2522_s18 }
0x1023   :  { %v1247_v39 = vpop.permute.xlu0 %1246 }
0x1024   :  { %v1249_v43 = vmul.f32 %v1247_v39, %v1244_v38 }
0x1026   :  { %v2935_v45 = vadd.f32 %v1250_v42, %v1249_v43 }
0x1028   :  { %v1365_v47 = vpack.c.bf16 %v2935_v45, %v2935_v45 }
0x102a   :  { %1370 = vrot.lane.b32.xlu0 %v1365_v47, %s2522_s18 }
0x1033   :  { %v1360_v57 = vpop.permute.xlu1 %1359 }
0x1034   :  { %v1362_v60 = vmul.f32 %v1360_v57, %v1357_v48 }
0x1036   :  { %v2941_v44 = vadd.f32 %v1363_v58, %v1362_v60  ;;  %v2386_v58 = vld [vmem:[%s3054_s5] sm:$0xff]  }
0x1038   :  { %v1366_v62 = vpack.c.bf16 %v2941_v44, %v2941_v44 }
0x103a   :  { %1483 = vrot.lane.b32.xlu1 %v1366_v62, %s2522_s18  ;;  %v2389_v62 = vld [vmem:[#allocation9 + $0x8] sm:$0xff]  }
0x109c   :  { %v1371_v53 = vpop.permute.xlu0 %1370 }
0x109d   :  { %2201 = vmatmul.mubr.msk.bf16.vlgmr.msra.gmra.mrb[40].mxu1 %vm315_vm7, %v1371_v53  ;;  %2209 = vmatmul.mubr.msk.bf16.vlgmr.msra.gmra.mrb[32].mxu0 %vm315_vm7, %v1371_v53 }
0x109e   :  { %2213 = vmatpush3.bf16.msra.mxu1 %v2710_v50  ;;  %2216 = vmatprep.mubr.msk.bf16.mxu1 %vm2519_vm0, %v2518_v0 }
0x109f   :  { %2214 = vmatprep.subr.bf16.mxu1 %v2518_v0  ;;  %2221 = vmatpush3.bf16.msra.mxu0 %v2384_v12 }
0x10a0   :  { %2222 = vmatprep.subr.bf16.mxu0 %v2518_v0  ;;  %2224 = vmatprep.mubr.msk.bf16.mxu0 %vm2519_vm0, %v2518_v0 }
0x10a2   :  { %2215 = vmatpush3.bf16.msra.mxu1 %v2715_v51 }
0x10a3   :  { %2228 = vmatprep.subr.bf16.mxu1 %v2518_v0  ;;  %2223 = vmatpush3.bf16.msra.mxu0 %v2385_v59 }
0x10a4   :  { %2236 = vmatprep.subr.bf16.mxu0 %v2518_v0 }
0x10ac   :  { %v1484_v49 = vpop.permute.xlu1 %1483 }
0x10ad   :  { %2217 = vmatmul.mubr.msk.bf16.vlgmr.msra.gmra.mrb[44].mxu1 %vm315_vm7, %v1484_v49 }
0x10ae   :  { %2229 = vmatpush3.bf16.msra.mxu1 %v2684_v40  ;;  %2232 = vmatprep.mubr.msk.bf16.mxu1 %vm2519_vm0, %v2518_v0 }
0x10af   :  { %2230 = vmatprep.subr.bf16.mxu1 %v2518_v0 }
0x10b2   :  { %2231 = vmatpush3.bf16.msra.mxu1 %v2691_v41 }
0x10b3   :  { %2244 = vmatprep.subr.bf16.mxu1 %v2518_v0 }
0x1170   :  { %v1409_v52 = vpop.f32.mrb[40].mxu1  ;;  %v1476_v2 = vpop.f32.mrb[32].mxu0 }
0x1171   :  { %v2202_v63 = vpop.f32.mrb[41].mxu1  ;;  %v2210_v1 = vpop.f32.mrb[33].mxu0  ;;  %v1422_v4 = vadd.f32 %v1409_v52, %v2663_v18  ;;  %v1415_v14 = vadd.f32 %v1409_v52, %v267_v13  ;;  %v1477_v16 = vadd.f32 %v2740_v9, %v1476_v2 }
0x1172   :  { %v1412_v3 = vpop.f32.mrb[42].mxu1  ;;  %v1479_v5 = vpop.f32.mrb[34].mxu0 }
0x1173   :  { %v2211_v6 = vpop.f32.mrb[35].mxu0  ;;  %1424 = vrot.lane.b32.xlu0 %v1422_v4, %s2511_s19  ;;  %v2203_v40 = vpop.f32.mrb[43].mxu1  ;;  %v1948_v15 = vmul.f32 -1.442695, %v1415_v14 }
0x1174   :  { %v2390_v40 = vld [vmem:[%s3052_s3] ss:$0 sm:$0xff] }
0x1175   :  { %2354 = vpow2.f32 %v1948_v15 }
0x117f   :  { %v2355_v19 = vpop.eup %2354 }
0x1180   :  { %v1522_v7 = vpop.f32.mrb[44].mxu1  ;;  %v1419_v21 = vadd.f32 1.0, %v2355_v19 }
0x1181   :  { %v2218_v8 = vpop.f32.mrb[45].mxu1  ;;  %v1535_v10 = vadd.f32 %v1522_v7, %v2731_v61  ;;  %v1528_v17 = vadd.f32 %v1522_v7, %v1477_v16 }
0x1182   :  { %v1525_v11 = vpop.f32.mrb[46].mxu1 }
0x1183   :  { %1537 = vrot.lane.b32.xlu1 %v1535_v10, %s2511_s19  ;;  %v2219_v41 = vpop.f32.mrb[47].mxu1  ;;  %v1951_v20 = vmul.f32 -1.442695, %v1528_v17 }
0x1185   :  { %2356 = vpow2.f32 %v1951_v20 }
0x1186   :  { %2358 = vrcp.f32 %v1419_v21 }
0x118f   :  { %v2357_v22 = vpop.eup %2356 }
0x1190   :  { %v2359_v23 = vpop.eup %2358  ;;  %v1532_v29 = vadd.f32 1.0, %v2357_v22 }
0x1191   :  { %v1434_v33 = vsub.f32 1.0, %v2359_v23  ;;  %v1440_v35 = vmul.f32 %v2359_v23, %v2935_v45 }
0x1192   :  { %2360 = vrcp.f32 %v1532_v29 }
0x119c   :  { %v2361_v28 = vpop.eup %2360 }
0x119d   :  { %v1547_v39 = vsub.f32 1.0, %v2361_v28  ;;  %v1553_v43 = vmul.f32 %v2361_v28, %v2941_v44  ;;  %v2388_v44 = vld [vmem:[#allocation9] sm:$0xff]  }
0x11e5   :  { %v1425_v25 = vpop.permute.xlu0 %1424 }
0x11e6   :  { %v1427_v27 = vmul.f32 %v2359_v23, %v1425_v25 }
0x11e8   :  { %1429 = vrot.lane.b32.xlu0 %v1427_v27, %s2511_s19 }
0x11f5   :  { %v1538_v46 = vpop.permute.xlu1 %1537 }
0x11f6   :  { %v1540_v30 = vmul.f32 %v2361_v28, %v1538_v46 }
0x11f8   :  { %1542 = vrot.lane.b32.xlu1 %v1540_v30, %s2511_s19 }
0x125a   :  { %v1430_v31 = vpop.permute.xlu0 %1429 }
0x125b   :  { %v1432_v24 = vadd.f32 %v1430_v31, %v267_v13 }
0x125d   :  { %2362 = vtanh.f32 %v1432_v24 }
0x1267   :  { %v2363_v56 = vpop.eup %2362 }
0x1268   :  { %1436 = vrot.lane.b32.xlu0 %v2363_v56, %s2522_s18 }
0x126a   :  { %v1543_v32 = vpop.permute.xlu1 %1542 }
0x126b   :  { %v1545_v26 = vadd.f32 %v1543_v32, %v1477_v16 }
0x126d   :  { %2364 = vtanh.f32 %v1545_v26 }
0x1277   :  { %v2365_v54 = vpop.eup %2364 }
0x1278   :  { %1549 = vrot.lane.b32.xlu1 %v2365_v54, %s2522_s18 }
0x12da   :  { %v1437_v34 = vpop.permute.xlu0 %1436 }
0x12db   :  { %v1439_v36 = vmul.f32 %v1437_v34, %v1434_v33 }
0x12dd   :  { %v2977_v37 = vadd.f32 %v1440_v35, %v1439_v36 }
0x12df   :  { %v1555_v38 = vpack.c.bf16 %v2977_v37, %v2977_v37 }
0x12e1   :  { %1560 = vrot.lane.b32.xlu0 %v1555_v38, %s2522_s18 }
0x12ea   :  { %v1550_v42 = vpop.permute.xlu1 %1549 }
0x12eb   :  { %v1552_v47 = vmul.f32 %v1550_v42, %v1547_v39 }
0x12ed   :  { %v2983_v48 = vadd.f32 %v1553_v43, %v1552_v47 }
0x12ef   :  { %v1556_v57 = vpack.c.bf16 %v2983_v48, %v2983_v48 }
0x12f1   :  { %1673 = vrot.lane.b32.xlu1 %v1556_v57, %s2522_s18 }
0x1353   :  { %v1561_v45 = vpop.permute.xlu0 %1560 }
0x1354   :  { %2225 = vmatmul.mubr.msk.bf16.vlgmr.msra.gmra.mrb[36].mxu0 %vm315_vm7, %v1561_v45  ;;  %2233 = vmatmul.mubr.msk.bf16.vlgmr.msra.gmra.mrb[48].mxu1 %vm315_vm7, %v1561_v45 }
0x1355   :  { %2237 = vmatpush3.bf16.msra.mxu0 %v2710_v50  ;;  %2240 = vmatprep.mubr.msk.bf16.mxu0 %vm2519_vm0, %v2518_v0  ;;  %v2387_v50 = vld [vmem:[%s3054_s5 + $0x8] sm:$0xff]  }
0x1356   :  { %2238 = vmatprep.subr.bf16.mxu0 %v2518_v0  ;;  %2245 = vmatpush3.bf16.msra.mxu1 %v2386_v58 }
0x1357   :  { %2246 = vmatprep.subr.bf16.mxu1 %v2518_v0  ;;  %2248 = vmatprep.mubr.msk.bf16.mxu1 %vm2519_vm0, %v2518_v0 }
0x1359   :  { %2239 = vmatpush3.bf16.msra.mxu0 %v2715_v51 }
0x135a   :  { %2247 = vmatpush3.bf16.msra.mxu1 %v2387_v50  ;;  %2252 = vmatprep.subr.bf16.mxu0 %v2518_v0 }
0x1363   :  { %v1674_v60 = vpop.permute.xlu1 %1673 }
0x1364   :  { %2241 = vmatmul.mubr.msk.bf16.vlgmr.msra.gmra.mrb[40].mxu0 %vm315_vm7, %v1674_v60  ;;  %v2391_v60 = vld [vmem:[%s3056_s7] ss:$0 sm:$0xff]  ;;  %s2523_s7 = smov [#allocation11]  }
0x1365   :  { %2253 = vmatpush3.bf16.msra.mxu0 %v2388_v44  ;;  %2256 = vmatprep.mubr.msk.bf16.mxu0 %vm2519_vm0, %v2518_v0  ;;  %s1877_s1 = sshll.u32 %s2523_s7, 4  ;;  %s1878_s1 = int_to_ptr.vmem [resolvable:$true] %s1877_s1 }
0x1366   :  { %2254 = vmatprep.subr.bf16.mxu0 %v2518_v0  ;;  %p2485_p5 = scmp.lt.s32.totalorder %s1878_s1, %s1878_s1 }
0x1369   :  { %2255 = vmatpush3.bf16.msra.mxu0 %v2389_v62 }
0x1427   :  { %v1599_v51 = vpop.f32.mrb[36].mxu0  ;;  %v1666_v53 = vpop.f32.mrb[48].mxu1 }
0x1428   :  { %v2226_v12 = vpop.f32.mrb[37].mxu0  ;;  %v2234_v59 = vpop.f32.mrb[49].mxu1  ;;  %v1612_v49 = vadd.f32 %v1599_v51, %v2663_v18  ;;  %v268_v18 = vadd.f32 %v2390_v40, %v2766_v55  ;;  %v1667_v10 = vadd.f32 %v2740_v9, %v1666_v53 }
0x1429   :  { %v1602_v52 = vpop.f32.mrb[38].mxu0  ;;  %v1669_v2 = vpop.f32.mrb[50].mxu1 }
0x142a   :  { %v2227_v63 = vpop.f32.mrb[39].mxu0  ;;  %1614 = vrot.lane.b32.xlu1 %v1612_v49, %s2511_s19  ;;  %v2235_v1 = vpop.f32.mrb[51].mxu1  ;;  %v1605_v7 = vadd.f32 %v1599_v51, %v268_v18 }
0x142c   :  { %v1953_v8 = vmul.f32 -1.442695, %v1605_v7 }
0x142e   :  { %2366 = vpow2.f32 %v1953_v8 }
0x1437   :  { %v1712_v4 = vpop.f32.mrb[40].mxu0 }
0x1438   :  { %v2242_v3 = vpop.f32.mrb[41].mxu0  ;;  %v1725_v5 = vadd.f32 %v1712_v4, %v2731_v61  ;;  %v1718_v11 = vadd.f32 %v1712_v4, %v1667_v10  ;;  %v2367_v41 = vpop.eup %2366 }
0x1439   :  { %v1715_v6 = vpop.f32.mrb[42].mxu0  ;;  %v1609_v14 = vadd.f32 1.0, %v2367_v41 }
0x143a   :  { %1727 = vrot.lane.b32.xlu0 %v1725_v5, %s2511_s19  ;;  %v2243_v0 = vpop.f32.mrb[43].mxu0  ;;  %v1956_v13 = vmul.f32 -1.442695, %v1718_v11 }
0x143c   :  { %2368 = vpow2.f32 %v1956_v13 }
0x143d   :  { %2370 = vrcp.f32 %v1609_v14 }
0x1446   :  { %v2369_v15 = vpop.eup %2368 }
0x1447   :  { %v2371_v16 = vpop.eup %2370  ;;  %v1722_v20 = vadd.f32 1.0, %v2369_v15 }
0x1448   :  { %v1624_v46 = vsub.f32 1.0, %v2371_v16  ;;  %v1630_v31 = vmul.f32 %v2371_v16, %v2977_v37 }
0x1449   :  { %2372 = vrcp.f32 %v1722_v20 }
0x1453   :  { %v2373_v55 = vpop.eup %2372 }
0x1454   :  { %v1737_v26 = vsub.f32 1.0, %v2373_v55  ;;  %v1743_v33 = vmul.f32 %v2373_v55, %v2983_v48 }
0x149c   :  { %v1615_v17 = vpop.permute.xlu1 %1614 }
0x149d   :  { %v1617_v19 = vmul.f32 %v2371_v16, %v1615_v17 }
0x149f   :  { %1619 = vrot.lane.b32.xlu1 %v1617_v19, %s2511_s19 }
0x14ac   :  { %v1728_v21 = vpop.permute.xlu0 %1727 }
0x14ad   :  { %v1730_v22 = vmul.f32 %v2373_v55, %v1728_v21 }
0x14af   :  { %1732 = vrot.lane.b32.xlu0 %v1730_v22, %s2511_s19 }
0x1511   :  { %v1620_v9 = vpop.permute.xlu1 %1619 }
0x1512   :  { %v1622_v23 = vadd.f32 %v1620_v9, %v268_v18 }
0x1514   :  { %2374 = vtanh.f32 %v1622_v23 }
0x151e   :  { %v2375_v25 = vpop.eup %2374 }
0x151f   :  { %1626 = vrot.lane.b32.xlu1 %v2375_v25, %s2522_s18 }
0x1521   :  { %v1733_v27 = vpop.permute.xlu0 %1732 }
0x1522   :  { %v1735_v29 = vadd.f32 %v1733_v27, %v1667_v10 }
0x1524   :  { %2376 = vtanh.f32 %v1735_v29 }
0x152e   :  { %v2377_v28 = vpop.eup %2376 }
0x152f   :  { %1739 = vrot.lane.b32.xlu0 %v2377_v28, %s2522_s18 }
0x1591   :  { %v1627_v30 = vpop.permute.xlu1 %1626 }
0x1592   :  { %v1629_v24 = vmul.f32 %v1627_v30, %v1624_v46 }
0x1594   :  { %v1631_v56 = vadd.f32 %v1630_v31, %v1629_v24 }
0x1596   :  { %v1745_v32 = vpack.c.bf16 %v1631_v56, %v1631_v56 }
0x1598   :  { %1748 = vrot.lane.b32.xlu1 %v1745_v32, %s2522_s18 }
0x15a1   :  { %v1740_v54 = vpop.permute.xlu0 %1739 }
0x15a2   :  { %v1742_v34 = vmul.f32 %v1740_v54, %v1737_v26 }
0x15a4   :  { %v1744_v35 = vadd.f32 %v1743_v33, %v1742_v34 }
0x15a6   :  { %v1746_v36 = vpack.c.bf16 %v1744_v35, %v1744_v35 }
0x15a8   :  { %1794 = vrot.lane.b32.xlu0 %v1746_v36, %s2522_s18 }
0x160a   :  { %v1749_v38 = vpop.permute.xlu1 %1748 }
0x160b   :  { %2249 = vmatmul.mubr.msk.bf16.vlgmr.msra.gmra.mrb[52].mxu1 %vm315_vm7, %v1749_v38 }
0x161a   :  { %v1795_v39 = vpop.permute.xlu0 %1794 }
0x161b   :  { %2257 = vmatmul.mubr.msk.bf16.vlgmr.msra.gmra.mrb[44].mxu0 %vm315_vm7, %v1795_v39 }
0x16de   :  { %v1787_v37 = vpop.f32.mrb[52].mxu1 }
0x16df   :  { %v2250_v42 = vpop.f32.mrb[53].mxu1  ;;  %v1788_v44 = vadd.f32 %v2391_v60, %v1787_v37 }
0x16e0   :  { %v1790_v43 = vpop.f32.mrb[54].mxu1 }
0x16e1   :  { %v2251_v47 = vpop.f32.mrb[55].mxu1 }
0x16ee   :  { %v1833_v57 = vpop.f32.mrb[44].mxu0 }
0x16ef   :  { %v2258_v45 = vpop.f32.mrb[45].mxu0  ;;  %v1846_v58 = vadd.f32 %v1833_v57, %v2731_v61  ;;  %v1839_v62 = vadd.f32 %v1833_v57, %v1788_v44 }
0x16f0   :  { %v1836_v48 = vpop.f32.mrb[46].mxu0 }
0x16f1   :  { %1848 = vrot.lane.b32.xlu0 %v1846_v58, %s2511_s19  ;;  %v2259_v50 = vpop.f32.mrb[47].mxu0  ;;  %v1959_v51 = vmul.f32 -1.442695, %v1839_v62 }
0x16f3   :  { %2378 = vpow2.f32 %v1959_v51 }
0x16fd   :  { %v2379_v53 = vpop.eup %2378 }
0x16fe   :  { %v1843_v12 = vadd.f32 1.0, %v2379_v53 }
0x1700   :  { %2380 = vrcp.f32 %v1843_v12 }
0x170a   :  { %v2381_v59 = vpop.eup %2380 }
0x170b   :  { %v1858_v1 = vsub.f32 1.0, %v2381_v59  ;;  %v1864_v3 = vmul.f32 %v2381_v59, %v1744_v35 }
0x1763   :  { %v1849_v49 = vpop.permute.xlu0 %1848 }
0x1764   :  { %v1851_v52 = vmul.f32 %v2381_v59, %v1849_v49 }
0x1766   :  { %1853 = vrot.lane.b32.xlu1 %v1851_v52, %s2511_s19  ;;  %s2480_s19 = scalar_lea.vmem %s1878_s1, 128 }
0x1767   :  { %p2481_p4 = scmp.ne.s32.totalorder %s1878_s1, %s2480_s19  ;;  %p2486_p6 = scmp.lt.s32.totalorder %s2480_s19, %s2480_s19 }
0x1769   :  { %p2487_p7 = por %p2486_p6, %p2485_p5 }
0x176b   :  { %p2488_p8 = pnand %p2487_p7, %p2481_p4 }
0x17d8   :  { %v1854_v61 = vpop.permute.xlu1 %1853 }
0x17d9   :  { %v1856_v2 = vadd.f32 %v1854_v61, %v1788_v44 }
0x17db   :  { %2382 = vtanh.f32 %v1856_v2 }
0x17e5   :  { %v2383_v63 = vpop.eup %2382 }
0x17e6   :  { %1860 = vrot.lane.b32.xlu0 %v2383_v63, %s2522_s18 }
0x1858   :  { %v1861_v4 = vpop.permute.xlu0 %1860 }
0x1859   :  { %v1863_v5 = vmul.f32 %v1861_v4, %v1858_v1 }
0x185b   :  { %v1865_v6 = vadd.f32 %v1864_v3, %v1863_v5 }
0x185d   :  { %1867 = vrot.lane.b32.xlu1 %v1865_v6, %s2522_s18 }
0x18cf   :  { %v1868_v0 = vpop.permute.xlu1 %1867 }
0x18d0   :  { %1870 = vst.msk [vmem:[#allocation11] sm:$0xff] %vm315_vm7, %v1868_v0 }
0x18d1   :  { %2491 = shalt.err (!%p2488_p8)
}
0x18d2   :  { %s2492_s14 = scalar_lea.hbm %s3058_s9, 128 }
0x18d3   :  { %p2493_p9 = scmp.ne.s32.totalorder %s3058_s9, %s2492_s14  ;;  %p2496_p10 = scmp.lt.u32.totalorder %s2492_s14, %s3058_s9 }
0x18d5   :  { %p2498_p11 = pnand %p2496_p10, %p2493_p9 }
0x18d7   :  { %2501 = shalt.err (!%p2498_p11)
}
0x18d8   :  { %1880 = dma.vmem_to_hbm [thread:$0]  %s1878_s1, 128, %s3058_s9, [#allocation5]  }
0x18d9   :  { %2508 = dma.done.wait [#allocation5], 128  }
0x18da   :  { %2509 = vsyncadd [#allocation5], 4294967168 }
0x18db   :  { %1884 = vsyncpa [#allocation4], 1 }
0x18dc   :  { %1885 = vsyncpa [#allocation7], 1 }
0x18dd   :  { %1886 = vsyncpa [#allocation10], 1 }
0x18de   :  { %1887 = vsyncpa [#allocation5], 1 }

</bundles_post_ra>
